<compile_context>
chip_gen: v7x
topology: tpu7x:2x2x1
jax: 0.10.0
libtpu: 0.0.40
codegen_flags: <defaults>
</compile_context>

<pallas_src>
import functools

import jax
import jax.numpy as jnp
from jax.experimental import pallas as pl
from jax.experimental.pallas import tpu as pltpu

# Layer sizes of the PyTorch module.
LAYER_DIMS = [3, 50, 200, 500, 300, 200, 100, 80, 30, 3]
NEG_SLOPE = 0.01   # PyTorch nn.LeakyReLU default negative_slope
OUT_COLS = 8       # last-layer columns padded to 8 (narrow, near lane-free store)


def _leaky_relu(h):
    # max-form: mul + max (2 VALU ops) instead of cmp + select + mul.
    return jnp.maximum(h, h * jnp.asarray(NEG_SLOPE, h.dtype))


def _round_up(n, m):
    return ((n + m - 1) // m) * m


def _chip_kind():
    try:
        return (getattr(jax.devices()[0], "device_kind", "") or "").lower()
    except Exception:
        return ""


def default_config(compute_dtype=jnp.bfloat16):
    """Per-generation defaults (tile size, elementwise dtype, VMEM limit, grid)."""
    kind = _chip_kind()
    is_v5 = "v5" in kind
    is_v7 = "v7" in kind
    # bf16 elementwise only where the VPU supports it (v6e/v7x); f32 on v5e.
    act_dtype = compute_dtype if (compute_dtype != jnp.float32 and not is_v5) \
        else jnp.float32
    return dict(
        tile_b=2048,
        compute_dtype=compute_dtype,
        act_dtype=act_dtype,
        vmem_limit_bytes=(48 if is_v7 else 64) * 1024 * 1024,
        min_grid=2 if is_v7 else 1,   # v7x: 2 TensorCores per chip
    )


def mlp_kernel(x_ref, *rest, act_dtype):
    """rest = (w0, b0, w1, b1, ..., w8, b8, o_ref).

    x_ref:  [tile_b, 3] batch tile (pipelined).
    w_i:    [d_in, d_out] weights, whole-array resident in VMEM (compute dtype).
    b_i:    [1, d_out] biases, whole-array resident in VMEM (f32).
    o_ref:  [tile_b, OUT_COLS] narrow output tile (f32).
    """
    o_ref = rest[-1]
    param_refs = rest[:-1]
    n_layers = len(param_refs) // 2

    x = x_ref[...].astype(jnp.float32)                 # [tile_b, 3]

    # ---- Layer 0: K=3 -> 3 broadcast FMAs on the VPU (f32) instead of a
    # nearly-empty MXU pass.
    w0 = param_refs[0][...].astype(jnp.float32)        # [3, 50]
    b0 = param_refs[1][...]                            # [1, 50] f32
    h = b0
    for k in range(LAYER_DIMS[0]):
        h = h + x[:, k:k + 1] * w0[k:k + 1, :]         # [tile_b, 50]
    h = _leaky_relu(h.astype(act_dtype))

    # ---- Layers 1..8: MXU matmuls with f32 accumulation; bias add in f32,
    # activation in act_dtype (bf16 on v6e/v7x, f32 on v5e / f32 path).
    for i in range(1, n_layers):
        w_ref = param_refs[2 * i]
        b_ref = param_refs[2 * i + 1]
        h = jnp.dot(h.astype(w_ref.dtype), w_ref[...],
                    preferred_element_type=jnp.float32) + b_ref[...]
        if i < n_layers - 1:
            h = _leaky_relu(h.astype(act_dtype))

    o_ref[...] = h.astype(o_ref.dtype)                 # narrow (tile_b, 8) store


@functools.partial(
    jax.jit,
    static_argnames=("tile_b", "compute_dtype", "act_dtype",
                     "vmem_limit_bytes", "min_grid"))
def mlp_forward(x, params, *, tile_b=2048, compute_dtype=jnp.bfloat16,
                act_dtype=jnp.float32, vmem_limit_bytes=64 * 1024 * 1024,
                min_grid=1):
    """x: [B, 3] float32.  params: flat list [w0, b0, ..., w8, b8] (f32).

    Weights are [in_features, out_features] so y = x @ W + b matches PyTorch's
    y = x @ W_pt.T + b.
    """
    B, F_in = x.shape
    assert F_in == LAYER_DIMS[0]

    n_layers = len(params) // 2
    out_dim = LAYER_DIMS[-1]

    # --- Prepare parameters: compute dtype for weights, f32 biases; pad the
    # final layer to OUT_COLS columns (zero columns) for a narrow output.
    prepared = []
    for i in range(n_layers):
        w = params[2 * i].astype(compute_dtype)
        b = params[2 * i + 1].astype(jnp.float32)
        if i == n_layers - 1:
            w = jnp.pad(w, ((0, 0), (0, OUT_COLS - out_dim)))
            b = jnp.pad(b, ((0, 0), (0, OUT_COLS - out_dim)))
        prepared.extend([w, b])

    # --- Adaptive batch tiling: balance the tile size across the grid so a
    # ragged B never pads by more than one sublane group per tile; on 2-TC
    # chips (v7x) force an even grid >= 2 so both cores get work.
    n_tiles = -(-B // tile_b)                       # cdiv
    if min_grid > 1 and B >= 16:
        n_tiles = _round_up(max(n_tiles, min_grid), min_grid)
    tile_b_eff = _round_up(-(-B // n_tiles), 8)
    B_pad = tile_b_eff * n_tiles
    if B_pad != B:
        x = jnp.pad(x, ((0, B_pad - B), (0, 0)))
    grid = (n_tiles,)

    # x / out tiles stream through the double-buffered pipeline; the small
    # weights/biases are placed whole in VMEM (loaded once, single-buffered).
    in_specs = [pl.BlockSpec((tile_b_eff, F_in), lambda i: (i, 0))]
    in_specs += [pl.BlockSpec(memory_space=pltpu.MemorySpace.VMEM)
                 for _ in prepared]
    out_specs = pl.BlockSpec((tile_b_eff, OUT_COLS), lambda i: (i, 0))

    flops = 2 * B_pad * sum(d_in * d_out for d_in, d_out
                            in zip(LAYER_DIMS[:-1], LAYER_DIMS[1:]))
    bytes_accessed = (B_pad * F_in * 4 + B_pad * OUT_COLS * 4
                      + sum(int(p.size) * p.dtype.itemsize for p in prepared))

    out_padded = pl.pallas_call(
        functools.partial(mlp_kernel, act_dtype=act_dtype),
        out_shape=jax.ShapeDtypeStruct((B_pad, OUT_COLS), jnp.float32),
        grid_spec=pltpu.PrefetchScalarGridSpec(
            num_scalar_prefetch=0,
            grid=grid,
            in_specs=in_specs,
            out_specs=out_specs,
        ),
        compiler_params=pltpu.CompilerParams(
            dimension_semantics=("parallel",),       # megacore-splittable axis
            vmem_limit_bytes=vmem_limit_bytes,
        ),
        cost_estimate=pl.CostEstimate(
            flops=int(flops), transcendentals=0,
            bytes_accessed=int(bytes_accessed)),
    )(x, *prepared)

    return out_padded[:B, :out_dim]


def init_params(key):
    """Deterministic init mimicking PyTorch Linear default U(-1/sqrt(fan_in), ...)."""
    params = []
    for d_in, d_out in zip(LAYER_DIMS[:-1], LAYER_DIMS[1:]):
        key, kw, kb = jax.random.split(key, 3)
        bound = 1.0 / float(d_in) ** 0.5
        w = jax.random.uniform(kw, (d_in, d_out), jnp.float32, -bound, bound)
        b = jax.random.uniform(kb, (1, d_out), jnp.float32, -bound, bound)
        params.extend([w, b])
    return params


def mlp_reference(x, params, compute_dtype=jnp.float32, act_dtype=jnp.float32):
    """Pure-JAX reference mirroring the kernel's dtype handling."""
    h = x.astype(jnp.float32)
    n_layers = len(params) // 2
    for i in range(n_layers):
        w = params[2 * i].astype(compute_dtype)
        b = params[2 * i + 1].astype(jnp.float32)
        if i == 0:
            h = h @ w.astype(jnp.float32) + b       # layer-0 FMA path is f32
        else:
            h = jnp.dot(h.astype(compute_dtype), w,
                        preferred_element_type=jnp.float32) + b
        if i < n_layers - 1:
            h = _leaky_relu(h.astype(act_dtype))
    return h


if __name__ == "__main__":
    key = jax.random.PRNGKey(0)
    key, kx1, kx2 = jax.random.split(key, 3)
    params = init_params(key)

    # 1) Full-f32 compute path: tight check against the f32 reference.
    B1 = 16
    x1 = jax.random.normal(kx1, (B1, LAYER_DIMS[0]), jnp.float32)
    cfg_f32 = default_config(compute_dtype=jnp.float32)
    out_f32 = mlp_forward(x1, params, **cfg_f32)
    jax.block_until_ready(out_f32)
    ref_f32 = mlp_reference(x1, params, compute_dtype=jnp.float32,
                            act_dtype=jnp.float32)
    assert out_f32.shape == (B1, LAYER_DIMS[-1])
    assert jnp.allclose(out_f32, ref_f32, atol=1e-3, rtol=1e-3), \
        "f32 kernel mismatch vs reference"

    # 2) Default chip-tuned path (bf16 weights; bf16 elementwise on v6e/v7x)
    #    with a ragged batch (exercises adaptive padding).
    B2 = 13
    x2 = jax.random.normal(kx2, (B2, LAYER_DIMS[0]), jnp.float32)
    cfg = default_config()
    out_bf16 = mlp_forward(x2, params, **cfg)
    jax.block_until_ready(out_bf16)
    ref_bf16 = mlp_reference(x2, params, compute_dtype=cfg["compute_dtype"],
                             act_dtype=cfg["act_dtype"])
    assert out_bf16.shape == (B2, LAYER_DIMS[-1])
    assert jnp.allclose(out_bf16, ref_bf16, atol=2e-2, rtol=2e-2), \
        "bf16 kernel mismatch vs reference"

    print("KERNEL_OK")
</pallas_src>

<mosaic_0001>
module attributes {stable_mosaic.version = 11 : i64} {
  func.func @mlp_kernel(%arg0: i32, %arg1: memref<16x3xf32, #tpu.memory_space<vmem>>, %arg2: memref<3x50xf32, #tpu.memory_space<vmem>>, %arg3: memref<1x50xf32, #tpu.memory_space<vmem>>, %arg4: memref<50x200xf32, #tpu.memory_space<vmem>>, %arg5: memref<1x200xf32, #tpu.memory_space<vmem>>, %arg6: memref<200x500xf32, #tpu.memory_space<vmem>>, %arg7: memref<1x500xf32, #tpu.memory_space<vmem>>, %arg8: memref<500x300xf32, #tpu.memory_space<vmem>>, %arg9: memref<1x300xf32, #tpu.memory_space<vmem>>, %arg10: memref<300x200xf32, #tpu.memory_space<vmem>>, %arg11: memref<1x200xf32, #tpu.memory_space<vmem>>, %arg12: memref<200x100xf32, #tpu.memory_space<vmem>>, %arg13: memref<1x100xf32, #tpu.memory_space<vmem>>, %arg14: memref<100x80xf32, #tpu.memory_space<vmem>>, %arg15: memref<1x80xf32, #tpu.memory_space<vmem>>, %arg16: memref<80x30xf32, #tpu.memory_space<vmem>>, %arg17: memref<1x30xf32, #tpu.memory_space<vmem>>, %arg18: memref<30x8xf32, #tpu.memory_space<vmem>>, %arg19: memref<1x8xf32, #tpu.memory_space<vmem>>, %arg20: memref<16x8xf32, #tpu.memory_space<vmem>>) attributes {dimension_semantics = [#tpu.dimension_semantics<parallel>], iteration_bounds = array<i64: 1>, scalar_prefetch = 0 : i64, scratch_operands = 0 : i64, tpu.core_type = #tpu.core_type<tc>, window_params = [{transform_indices = @transform_0, window_bounds = array<i64: 16, 3>}, {pipeline_mode = #tpu.pipeline_mode<synchronous>, transform_indices = @transform_1, window_bounds = array<i64: 3, 50>}, {pipeline_mode = #tpu.pipeline_mode<synchronous>, transform_indices = @transform_2, window_bounds = array<i64: 1, 50>}, {pipeline_mode = #tpu.pipeline_mode<synchronous>, transform_indices = @transform_3, window_bounds = array<i64: 50, 200>}, {pipeline_mode = #tpu.pipeline_mode<synchronous>, transform_indices = @transform_4, window_bounds = array<i64: 1, 200>}, {pipeline_mode = #tpu.pipeline_mode<synchronous>, transform_indices = @transform_5, window_bounds = array<i64: 200, 500>}, {pipeline_mode = #tpu.pipeline_mode<synchronous>, transform_indices = @transform_6, window_bounds = array<i64: 1, 500>}, {pipeline_mode = #tpu.pipeline_mode<synchronous>, transform_indices = @transform_7, window_bounds = array<i64: 500, 300>}, {pipeline_mode = #tpu.pipeline_mode<synchronous>, transform_indices = @transform_8, window_bounds = array<i64: 1, 300>}, {pipeline_mode = #tpu.pipeline_mode<synchronous>, transform_indices = @transform_9, window_bounds = array<i64: 300, 200>}, {pipeline_mode = #tpu.pipeline_mode<synchronous>, transform_indices = @transform_10, window_bounds = array<i64: 1, 200>}, {pipeline_mode = #tpu.pipeline_mode<synchronous>, transform_indices = @transform_11, window_bounds = array<i64: 200, 100>}, {pipeline_mode = #tpu.pipeline_mode<synchronous>, transform_indices = @transform_12, window_bounds = array<i64: 1, 100>}, {pipeline_mode = #tpu.pipeline_mode<synchronous>, transform_indices = @transform_13, window_bounds = array<i64: 100, 80>}, {pipeline_mode = #tpu.pipeline_mode<synchronous>, transform_indices = @transform_14, window_bounds = array<i64: 1, 80>}, {pipeline_mode = #tpu.pipeline_mode<synchronous>, transform_indices = @transform_15, window_bounds = array<i64: 80, 30>}, {pipeline_mode = #tpu.pipeline_mode<synchronous>, transform_indices = @transform_16, window_bounds = array<i64: 1, 30>}, {pipeline_mode = #tpu.pipeline_mode<synchronous>, transform_indices = @transform_17, window_bounds = array<i64: 30, 8>}, {pipeline_mode = #tpu.pipeline_mode<synchronous>, transform_indices = @transform_18, window_bounds = array<i64: 1, 8>}, {transform_indices = @transform_19, window_bounds = array<i64: 16, 8>}]} {
    %c0 = arith.constant 0 : index
    %c0_0 = arith.constant 0 : index
    %0 = vector.load %arg1[%c0, %c0_0] : memref<16x3xf32, #tpu.memory_space<vmem>>, vector<16x3xf32>
    %c0_1 = arith.constant 0 : index
    %c0_2 = arith.constant 0 : index
    %1 = vector.load %arg2[%c0_1, %c0_2] : memref<3x50xf32, #tpu.memory_space<vmem>>, vector<3x50xf32>
    %c0_3 = arith.constant 0 : index
    %c0_4 = arith.constant 0 : index
    %2 = vector.load %arg3[%c0_3, %c0_4] : memref<1x50xf32, #tpu.memory_space<vmem>>, vector<1x50xf32>
    %3 = vector.extract_strided_slice %0 {offsets = [0, 0], sizes = [16, 1], strides = [1, 1]} : vector<16x3xf32> to vector<16x1xf32>
    %4 = vector.extract_strided_slice %1 {offsets = [0, 0], sizes = [1, 50], strides = [1, 1]} : vector<3x50xf32> to vector<1x50xf32>
    %5 = vector.broadcast %3 : vector<16x1xf32> to vector<16x50xf32>
    %6 = vector.broadcast %4 : vector<1x50xf32> to vector<16x50xf32>
    %7 = arith.mulf %5, %6 : vector<16x50xf32>
    %8 = vector.broadcast %2 : vector<1x50xf32> to vector<16x50xf32>
    %9 = arith.addf %8, %7 : vector<16x50xf32>
    %10 = vector.extract_strided_slice %0 {offsets = [0, 1], sizes = [16, 1], strides = [1, 1]} : vector<16x3xf32> to vector<16x1xf32>
    %11 = vector.extract_strided_slice %1 {offsets = [1, 0], sizes = [1, 50], strides = [1, 1]} : vector<3x50xf32> to vector<1x50xf32>
    %12 = vector.broadcast %10 : vector<16x1xf32> to vector<16x50xf32>
    %13 = vector.broadcast %11 : vector<1x50xf32> to vector<16x50xf32>
    %14 = arith.mulf %12, %13 : vector<16x50xf32>
    %15 = arith.addf %9, %14 : vector<16x50xf32>
    %16 = vector.extract_strided_slice %0 {offsets = [0, 2], sizes = [16, 1], strides = [1, 1]} : vector<16x3xf32> to vector<16x1xf32>
    %17 = vector.extract_strided_slice %1 {offsets = [2, 0], sizes = [1, 50], strides = [1, 1]} : vector<3x50xf32> to vector<1x50xf32>
    %18 = vector.broadcast %16 : vector<16x1xf32> to vector<16x50xf32>
    %19 = vector.broadcast %17 : vector<1x50xf32> to vector<16x50xf32>
    %20 = arith.mulf %18, %19 : vector<16x50xf32>
    %21 = arith.addf %15, %20 : vector<16x50xf32>
    %cst = arith.constant 0.00999999977 : f32
    %22 = vector.broadcast %cst : f32 to vector<16x50xf32>
    %23 = arith.mulf %21, %22 : vector<16x50xf32>
    %24 = arith.maximumf %21, %23 : vector<16x50xf32>
    %c0_5 = arith.constant 0 : index
    %c0_6 = arith.constant 0 : index
    %25 = vector.load %arg4[%c0_5, %c0_6] : memref<50x200xf32, #tpu.memory_space<vmem>>, vector<50x200xf32>
    %cst_7 = arith.constant dense<0.000000e+00> : vector<16x200xf32>
    %26 = tpu.matmul %24, %25, %cst_7 {dimension_numbers = #tpu.dot_dimension_numbers<[1], [0], [0], [1], [0, 0, 1, 1], [], []>} : vector<16x50xf32>, vector<50x200xf32>, vector<16x200xf32> -> vector<16x200xf32>
    %c0_8 = arith.constant 0 : index
    %c0_9 = arith.constant 0 : index
    %27 = vector.load %arg5[%c0_8, %c0_9] : memref<1x200xf32, #tpu.memory_space<vmem>>, vector<1x200xf32>
    %28 = vector.broadcast %27 : vector<1x200xf32> to vector<16x200xf32>
    %29 = arith.addf %26, %28 : vector<16x200xf32>
    %cst_10 = arith.constant 0.00999999977 : f32
    %30 = vector.broadcast %cst_10 : f32 to vector<16x200xf32>
    %31 = arith.mulf %29, %30 : vector<16x200xf32>
    %32 = arith.maximumf %29, %31 : vector<16x200xf32>
    %c0_11 = arith.constant 0 : index
    %c0_12 = arith.constant 0 : index
    %33 = vector.load %arg6[%c0_11, %c0_12] : memref<200x500xf32, #tpu.memory_space<vmem>>, vector<200x500xf32>
    %cst_13 = arith.constant dense<0.000000e+00> : vector<16x500xf32>
    %34 = tpu.matmul %32, %33, %cst_13 {dimension_numbers = #tpu.dot_dimension_numbers<[1], [0], [0], [1], [0, 0, 1, 1], [], []>} : vector<16x200xf32>, vector<200x500xf32>, vector<16x500xf32> -> vector<16x500xf32>
    %c0_14 = arith.constant 0 : index
    %c0_15 = arith.constant 0 : index
    %35 = vector.load %arg7[%c0_14, %c0_15] : memref<1x500xf32, #tpu.memory_space<vmem>>, vector<1x500xf32>
    %36 = vector.broadcast %35 : vector<1x500xf32> to vector<16x500xf32>
    %37 = arith.addf %34, %36 : vector<16x500xf32>
    %cst_16 = arith.constant 0.00999999977 : f32
    %38 = vector.broadcast %cst_16 : f32 to vector<16x500xf32>
    %39 = arith.mulf %37, %38 : vector<16x500xf32>
    %40 = arith.maximumf %37, %39 : vector<16x500xf32>
    %c0_17 = arith.constant 0 : index
    %c0_18 = arith.constant 0 : index
    %41 = vector.load %arg8[%c0_17, %c0_18] : memref<500x300xf32, #tpu.memory_space<vmem>>, vector<500x300xf32>
    %cst_19 = arith.constant dense<0.000000e+00> : vector<16x300xf32>
    %42 = tpu.matmul %40, %41, %cst_19 {dimension_numbers = #tpu.dot_dimension_numbers<[1], [0], [0], [1], [0, 0, 1, 1], [], []>} : vector<16x500xf32>, vector<500x300xf32>, vector<16x300xf32> -> vector<16x300xf32>
    %c0_20 = arith.constant 0 : index
    %c0_21 = arith.constant 0 : index
    %43 = vector.load %arg9[%c0_20, %c0_21] : memref<1x300xf32, #tpu.memory_space<vmem>>, vector<1x300xf32>
    %44 = vector.broadcast %43 : vector<1x300xf32> to vector<16x300xf32>
    %45 = arith.addf %42, %44 : vector<16x300xf32>
    %cst_22 = arith.constant 0.00999999977 : f32
    %46 = vector.broadcast %cst_22 : f32 to vector<16x300xf32>
    %47 = arith.mulf %45, %46 : vector<16x300xf32>
    %48 = arith.maximumf %45, %47 : vector<16x300xf32>
    %c0_23 = arith.constant 0 : index
    %c0_24 = arith.constant 0 : index
    %49 = vector.load %arg10[%c0_23, %c0_24] : memref<300x200xf32, #tpu.memory_space<vmem>>, vector<300x200xf32>
    %cst_25 = arith.constant dense<0.000000e+00> : vector<16x200xf32>
    %50 = tpu.matmul %48, %49, %cst_25 {dimension_numbers = #tpu.dot_dimension_numbers<[1], [0], [0], [1], [0, 0, 1, 1], [], []>} : vector<16x300xf32>, vector<300x200xf32>, vector<16x200xf32> -> vector<16x200xf32>
    %c0_26 = arith.constant 0 : index
    %c0_27 = arith.constant 0 : index
    %51 = vector.load %arg11[%c0_26, %c0_27] : memref<1x200xf32, #tpu.memory_space<vmem>>, vector<1x200xf32>
    %52 = vector.broadcast %51 : vector<1x200xf32> to vector<16x200xf32>
    %53 = arith.addf %50, %52 : vector<16x200xf32>
    %cst_28 = arith.constant 0.00999999977 : f32
    %54 = vector.broadcast %cst_28 : f32 to vector<16x200xf32>
    %55 = arith.mulf %53, %54 : vector<16x200xf32>
    %56 = arith.maximumf %53, %55 : vector<16x200xf32>
    %c0_29 = arith.constant 0 : index
    %c0_30 = arith.constant 0 : index
    %57 = vector.load %arg12[%c0_29, %c0_30] : memref<200x100xf32, #tpu.memory_space<vmem>>, vector<200x100xf32>
    %cst_31 = arith.constant dense<0.000000e+00> : vector<16x100xf32>
    %58 = tpu.matmul %56, %57, %cst_31 {dimension_numbers = #tpu.dot_dimension_numbers<[1], [0], [0], [1], [0, 0, 1, 1], [], []>} : vector<16x200xf32>, vector<200x100xf32>, vector<16x100xf32> -> vector<16x100xf32>
    %c0_32 = arith.constant 0 : index
    %c0_33 = arith.constant 0 : index
    %59 = vector.load %arg13[%c0_32, %c0_33] : memref<1x100xf32, #tpu.memory_space<vmem>>, vector<1x100xf32>
    %60 = vector.broadcast %59 : vector<1x100xf32> to vector<16x100xf32>
    %61 = arith.addf %58, %60 : vector<16x100xf32>
    %cst_34 = arith.constant 0.00999999977 : f32
    %62 = vector.broadcast %cst_34 : f32 to vector<16x100xf32>
    %63 = arith.mulf %61, %62 : vector<16x100xf32>
    %64 = arith.maximumf %61, %63 : vector<16x100xf32>
    %c0_35 = arith.constant 0 : index
    %c0_36 = arith.constant 0 : index
    %65 = vector.load %arg14[%c0_35, %c0_36] : memref<100x80xf32, #tpu.memory_space<vmem>>, vector<100x80xf32>
    %cst_37 = arith.constant dense<0.000000e+00> : vector<16x80xf32>
    %66 = tpu.matmul %64, %65, %cst_37 {dimension_numbers = #tpu.dot_dimension_numbers<[1], [0], [0], [1], [0, 0, 1, 1], [], []>} : vector<16x100xf32>, vector<100x80xf32>, vector<16x80xf32> -> vector<16x80xf32>
    %c0_38 = arith.constant 0 : index
    %c0_39 = arith.constant 0 : index
    %67 = vector.load %arg15[%c0_38, %c0_39] : memref<1x80xf32, #tpu.memory_space<vmem>>, vector<1x80xf32>
    %68 = vector.broadcast %67 : vector<1x80xf32> to vector<16x80xf32>
    %69 = arith.addf %66, %68 : vector<16x80xf32>
    %cst_40 = arith.constant 0.00999999977 : f32
    %70 = vector.broadcast %cst_40 : f32 to vector<16x80xf32>
    %71 = arith.mulf %69, %70 : vector<16x80xf32>
    %72 = arith.maximumf %69, %71 : vector<16x80xf32>
    %c0_41 = arith.constant 0 : index
    %c0_42 = arith.constant 0 : index
    %73 = vector.load %arg16[%c0_41, %c0_42] : memref<80x30xf32, #tpu.memory_space<vmem>>, vector<80x30xf32>
    %cst_43 = arith.constant dense<0.000000e+00> : vector<16x30xf32>
    %74 = tpu.matmul %72, %73, %cst_43 {dimension_numbers = #tpu.dot_dimension_numbers<[1], [0], [0], [1], [0, 0, 1, 1], [], []>} : vector<16x80xf32>, vector<80x30xf32>, vector<16x30xf32> -> vector<16x30xf32>
    %c0_44 = arith.constant 0 : index
    %c0_45 = arith.constant 0 : index
    %75 = vector.load %arg17[%c0_44, %c0_45] : memref<1x30xf32, #tpu.memory_space<vmem>>, vector<1x30xf32>
    %76 = vector.broadcast %75 : vector<1x30xf32> to vector<16x30xf32>
    %77 = arith.addf %74, %76 : vector<16x30xf32>
    %cst_46 = arith.constant 0.00999999977 : f32
    %78 = vector.broadcast %cst_46 : f32 to vector<16x30xf32>
    %79 = arith.mulf %77, %78 : vector<16x30xf32>
    %80 = arith.maximumf %77, %79 : vector<16x30xf32>
    %c0_47 = arith.constant 0 : index
    %c0_48 = arith.constant 0 : index
    %81 = vector.load %arg18[%c0_47, %c0_48] : memref<30x8xf32, #tpu.memory_space<vmem>>, vector<30x8xf32>
    %cst_49 = arith.constant dense<0.000000e+00> : vector<16x8xf32>
    %82 = tpu.matmul %80, %81, %cst_49 {dimension_numbers = #tpu.dot_dimension_numbers<[1], [0], [0], [1], [0, 0, 1, 1], [], []>} : vector<16x30xf32>, vector<30x8xf32>, vector<16x8xf32> -> vector<16x8xf32>
    %c0_50 = arith.constant 0 : index
    %c0_51 = arith.constant 0 : index
    %83 = vector.load %arg19[%c0_50, %c0_51] : memref<1x8xf32, #tpu.memory_space<vmem>>, vector<1x8xf32>
    %84 = vector.broadcast %83 : vector<1x8xf32> to vector<16x8xf32>
    %85 = arith.addf %82, %84 : vector<16x8xf32>
    %c0_52 = arith.constant 0 : index
    %c0_53 = arith.constant 0 : index
    %86 = vector.load %arg20[%c0_52, %c0_53] : memref<16x8xf32, #tpu.memory_space<vmem>>, vector<16x8xf32>
    tpu.vector_store %arg20[%c0_52, %c0_53], %85 {strides = array<i32>} : memref<16x8xf32, #tpu.memory_space<vmem>>, vector<16x8xf32>,
    return
  }
  func.func @transform_0(%arg0: i32) -> (i32, i32) {
    %c0_i32 = arith.constant 0 : i32
    %c0_i32_0 = arith.constant 0 : i32
    return %arg0, %c0_i32 : i32, i32
  }
  func.func @transform_1(%arg0: i32) -> (i32, i32) {
    %c0_i32 = arith.constant 0 : i32
    %c0_i32_0 = arith.constant 0 : i32
    %c0_i32_1 = arith.constant 0 : i32
    return %c0_i32, %c0_i32_0 : i32, i32
  }
  func.func @transform_2(%arg0: i32) -> (i32, i32) {
    %c0_i32 = arith.constant 0 : i32
    %c0_i32_0 = arith.constant 0 : i32
    %c0_i32_1 = arith.constant 0 : i32
    return %c0_i32, %c0_i32_0 : i32, i32
  }
  func.func @transform_3(%arg0: i32) -> (i32, i32) {
    %c0_i32 = arith.constant 0 : i32
    %c0_i32_0 = arith.constant 0 : i32
    %c0_i32_1 = arith.constant 0 : i32
    return %c0_i32, %c0_i32_0 : i32, i32
  }
  func.func @transform_4(%arg0: i32) -> (i32, i32) {
    %c0_i32 = arith.constant 0 : i32
    %c0_i32_0 = arith.constant 0 : i32
    %c0_i32_1 = arith.constant 0 : i32
    return %c0_i32, %c0_i32_0 : i32, i32
  }
  func.func @transform_5(%arg0: i32) -> (i32, i32) {
    %c0_i32 = arith.constant 0 : i32
    %c0_i32_0 = arith.constant 0 : i32
    %c0_i32_1 = arith.constant 0 : i32
    return %c0_i32, %c0_i32_0 : i32, i32
  }
  func.func @transform_6(%arg0: i32) -> (i32, i32) {
    %c0_i32 = arith.constant 0 : i32
    %c0_i32_0 = arith.constant 0 : i32
    %c0_i32_1 = arith.constant 0 : i32
    return %c0_i32, %c0_i32_0 : i32, i32
  }
  func.func @transform_7(%arg0: i32) -> (i32, i32) {
    %c0_i32 = arith.constant 0 : i32
    %c0_i32_0 = arith.constant 0 : i32
    %c0_i32_1 = arith.constant 0 : i32
    return %c0_i32, %c0_i32_0 : i32, i32
  }
  func.func @transform_8(%arg0: i32) -> (i32, i32) {
    %c0_i32 = arith.constant 0 : i32
    %c0_i32_0 = arith.constant 0 : i32
    %c0_i32_1 = arith.constant 0 : i32
    return %c0_i32, %c0_i32_0 : i32, i32
  }
  func.func @transform_9(%arg0: i32) -> (i32, i32) {
    %c0_i32 = arith.constant 0 : i32
    %c0_i32_0 = arith.constant 0 : i32
    %c0_i32_1 = arith.constant 0 : i32
    return %c0_i32, %c0_i32_0 : i32, i32
  }
  func.func @transform_10(%arg0: i32) -> (i32, i32) {
    %c0_i32 = arith.constant 0 : i32
    %c0_i32_0 = arith.constant 0 : i32
    %c0_i32_1 = arith.constant 0 : i32
    return %c0_i32, %c0_i32_0 : i32, i32
  }
  func.func @transform_11(%arg0: i32) -> (i32, i32) {
    %c0_i32 = arith.constant 0 : i32
    %c0_i32_0 = arith.constant 0 : i32
    %c0_i32_1 = arith.constant 0 : i32
    return %c0_i32, %c0_i32_0 : i32, i32
  }
  func.func @transform_12(%arg0: i32) -> (i32, i32) {
    %c0_i32 = arith.constant 0 : i32
    %c0_i32_0 = arith.constant 0 : i32
    %c0_i32_1 = arith.constant 0 : i32
    return %c0_i32, %c0_i32_0 : i32, i32
  }
  func.func @transform_13(%arg0: i32) -> (i32, i32) {
    %c0_i32 = arith.constant 0 : i32
    %c0_i32_0 = arith.constant 0 : i32
    %c0_i32_1 = arith.constant 0 : i32
    return %c0_i32, %c0_i32_0 : i32, i32
  }
  func.func @transform_14(%arg0: i32) -> (i32, i32) {
    %c0_i32 = arith.constant 0 : i32
    %c0_i32_0 = arith.constant 0 : i32
    %c0_i32_1 = arith.constant 0 : i32
    return %c0_i32, %c0_i32_0 : i32, i32
  }
  func.func @transform_15(%arg0: i32) -> (i32, i32) {
    %c0_i32 = arith.constant 0 : i32
    %c0_i32_0 = arith.constant 0 : i32
    %c0_i32_1 = arith.constant 0 : i32
    return %c0_i32, %c0_i32_0 : i32, i32
  }
  func.func @transform_16(%arg0: i32) -> (i32, i32) {
    %c0_i32 = arith.constant 0 : i32
    %c0_i32_0 = arith.constant 0 : i32
    %c0_i32_1 = arith.constant 0 : i32
    return %c0_i32, %c0_i32_0 : i32, i32
  }
  func.func @transform_17(%arg0: i32) -> (i32, i32) {
    %c0_i32 = arith.constant 0 : i32
    %c0_i32_0 = arith.constant 0 : i32
    %c0_i32_1 = arith.constant 0 : i32
    return %c0_i32, %c0_i32_0 : i32, i32
  }
  func.func @transform_18(%arg0: i32) -> (i32, i32) {
    %c0_i32 = arith.constant 0 : i32
    %c0_i32_0 = arith.constant 0 : i32
    %c0_i32_1 = arith.constant 0 : i32
    return %c0_i32, %c0_i32_0 : i32, i32
  }
  func.func @transform_19(%arg0: i32) -> (i32, i32) {
    %c0_i32 = arith.constant 0 : i32
    %c0_i32_0 = arith.constant 0 : i32
    return %arg0, %c0_i32 : i32, i32
  }
}

</mosaic_0001>

<bundles_post_ra>
// kernel: mlp_forward.1
= control target key start
LH: loop header
LB: loop body
LE: loop exit
PB: predicated region body
PF: predicated region fallthrough
CT: control target
= control target key end

     0   :  { %s3710_s0 = inlined_call_operand.hbm [shape: f32[16,3], index: 0, kind: input, shape index: {}]   ;;  %s3711_s1 = inlined_call_operand.hbm [shape: f32[3,50], index: 1, kind: input, shape index: {}]   ;;  %s3712_s2 = inlined_call_operand.hbm [shape: f32[1,50], index: 2, kind: input, shape index: {}]   ;;  %s3713_s3 = inlined_call_operand.hbm [shape: f32[50,200], index: 3, kind: input, shape index: {}]   ;;  %s3714_s4 = inlined_call_operand.hbm [shape: f32[1,200], index: 4, kind: input, shape index: {}]   ;;  %s3715_s5 = inlined_call_operand.hbm [shape: f32[200,500], index: 5, kind: input, shape index: {}]   ;;  %s3716_s6 = inlined_call_operand.hbm [shape: f32[1,500], index: 6, kind: input, shape index: {}]   ;;  %s3717_s7 = inlined_call_operand.hbm [shape: f32[500,300], index: 7, kind: input, shape index: {}]   ;;  %s3718_s8 = inlined_call_operand.hbm [shape: f32[1,300], index: 8, kind: input, shape index: {}]   ;;  %s3719_s9 = inlined_call_operand.hbm [shape: f32[300,200], index: 9, kind: input, shape index: {}]   ;;  %s3720_s10 = inlined_call_operand.hbm [shape: f32[1,200], index: 10, kind: input, shape index: {}]   ;;  %s3721_s11 = inlined_call_operand.hbm [shape: f32[200,100], index: 11, kind: input, shape index: {}]   ;;  %s3722_s12 = inlined_call_operand.hbm [shape: f32[1,100], index: 12, kind: input, shape index: {}]   ;;  %s3723_s13 = inlined_call_operand.hbm [shape: f32[100,80], index: 13, kind: input, shape index: {}]   ;;  %s3724_s14 = inlined_call_operand.hbm [shape: f32[1,80], index: 14, kind: input, shape index: {}]   ;;  %s3725_s15 = inlined_call_operand.hbm [shape: f32[80,30], index: 15, kind: input, shape index: {}]   ;;  %s3726_s16 = inlined_call_operand.hbm [shape: f32[1,30], index: 16, kind: input, shape index: {}]   ;;  %s3727_s17 = inlined_call_operand.hbm [shape: f32[30,8], index: 17, kind: input, shape index: {}]   ;;  %s3728_s18 = inlined_call_operand.hbm [shape: f32[1,8], index: 18, kind: input, shape index: {}]   ;;  %s3729_s19 = inlined_call_operand.hbm [shape: f32[16,8], index: 19, kind: output, shape index: {}]  }
   0x1   :  { %3736 = sst [smem:[#allocation44_spill]] %s3710_s0 }
   0x2   :  { %3737 = sst [smem:[#allocation45_spill]] %s3711_s1 }
   0x3   :  { %3738 = sst [smem:[#allocation46_spill]] %s3712_s2 }
   0x4   :  { %3739 = sst [smem:[#allocation47_spill]] %s3713_s3 }
   0x5   :  { %3740 = sst [smem:[#allocation48_spill]] %s3729_s19 }
   0x6   :  { %24 = vsyncpa [#allocation3], 0 }
   0x7   :  { %25 = vsyncpa [#allocation6], 0 }
   0x8   :  { %26 = vsyncpa [#allocation9], 0 }
   0x9   :  { %27 = vsyncpa [#allocation12], 0 }
   0xa   :  { %28 = vsyncpa [#allocation15], 0 }
   0xb   :  { %29 = vsyncpa [#allocation18], 0 }
   0xc   :  { %30 = vsyncpa [#allocation21], 0 }
   0xd   :  { %31 = vsyncpa [#allocation24], 0 }
   0xe   :  { %32 = vsyncpa [#allocation27], 0 }
   0xf   :  { %33 = vsyncpa [#allocation30], 0 }
  0x10   :  { %34 = vsyncpa [#allocation4], 0  ;;  %s3208_s0 = smov [#allocation5]   ;;  %s3209_s20 = smov [#allocation8]  }
  0x11   :  { %s53_s30 = sshll.u32 %s3208_s0, 4  ;;  %s72_s21 = sshll.u32 %s3209_s20, 4  ;;  %s54_s30 = int_to_ptr.vmem [resolvable:$true] %s53_s30  ;;  %s3342_s21 = int_to_ptr.vmem [resolvable:$true] %s72_s21 }
  0x12   :  { %s3741_s2 = sld [smem:[#allocation45_spill]] }
  0x18   :  { %s2746_s23 = scalar_lea.hbm %s3741_s2, 64 }
  0x19   :  { %p2747_p0 = scmp.ne.s32.totalorder %s3741_s2, %s2746_s23  ;;  %p2750_p1 = scmp.lt.u32.totalorder %s2746_s23, %s3741_s2 }
  0x1b   :  { %p2752_p2 = pnand %p2750_p1, %p2747_p0 }
  0x1d   :  { %2755 = shalt.err (!%p2752_p2)
}
  0x1e   :  { %s2756_s27 = scalar_lea.vmem %s54_s30, 64  ;;  %p2761_p4 = scmp.lt.s32.totalorder %s54_s30, %s54_s30 }
  0x1f   :  { %p2757_p3 = scmp.ne.s32.totalorder %s54_s30, %s2756_s27  ;;  %p2762_p5 = scmp.lt.s32.totalorder %s2756_s27, %s2756_s27 }
  0x21   :  { %p2763_p6 = por %p2762_p5, %p2761_p4 }
  0x23   :  { %p2764_p7 = pnand %p2763_p6, %p2757_p3 }
  0x25   :  { %2767 = shalt.err (!%p2764_p7)
}
  0x26   :  { %56 = dma.hbm_to_vmem [thread:$0]  %s3741_s2, 64, %s54_s30, [#allocation6]  }
  0x27   :  { %s3742_s1 = sld [smem:[#allocation47_spill]] }
  0x2d   :  { %s2768_s22 = scalar_lea.hbm %s3742_s1, 1792 }
  0x2e   :  { %p2769_p8 = scmp.ne.s32.totalorder %s3742_s1, %s2768_s22  ;;  %p2772_p9 = scmp.lt.u32.totalorder %s2768_s22, %s3742_s1 }
  0x30   :  { %p2774_p10 = pnand %p2772_p9, %p2769_p8 }
  0x32   :  { %2777 = shalt.err (!%p2774_p10)
}
  0x33   :  { %s2778_s26 = scalar_lea.vmem %s3342_s21, 1792  ;;  %p2783_p12 = scmp.lt.s32.totalorder %s3342_s21, %s3342_s21 }
  0x34   :  { %p2779_p11 = scmp.ne.s32.totalorder %s3342_s21, %s2778_s26  ;;  %p2784_p13 = scmp.lt.s32.totalorder %s2778_s26, %s2778_s26 }
  0x36   :  { %p2785_p0 = por %p2784_p13, %p2783_p12 }
  0x38   :  { %p2786_p1 = pnand %p2785_p0, %p2779_p11 }
  0x3a   :  { %2789 = shalt.err (!%p2786_p1)
}
  0x3b   :  { %s3735_s30 = smov 256   ;;  %s3211_s2 = smov 16  }
  0x3c   :  { %78 = dma.hbm_to_vmem [thread:$0]  %s3742_s1, 1792, %s3342_s21, [#allocation9], %s3735_s30, %s3735_s30, %s3211_s2  }
  0x3d   :  { %s3212_s29 = smov [#allocation11]   ;;  %s2790_s24 = scalar_lea.hbm %s3715_s5, 12800 }
  0x3e   :  { %s94_s0 = sshll.u32 %s3212_s29, 4  ;;  %p2791_p2 = scmp.ne.s32.totalorder %s3715_s5, %s2790_s24  ;;  %s95_s0 = int_to_ptr.vmem [resolvable:$true] %s94_s0 }
  0x3f   :  { %p2794_p3 = scmp.lt.u32.totalorder %s2790_s24, %s3715_s5 }
  0x41   :  { %p2796_p4 = pnand %p2794_p3, %p2791_p2 }
  0x43   :  { %2799 = shalt.err (!%p2796_p4)
}
  0x44   :  { %s2800_s19 = scalar_lea.vmem %s95_s0, 12800  ;;  %p2805_p6 = scmp.lt.s32.totalorder %s95_s0, %s95_s0 }
  0x45   :  { %p2801_p5 = scmp.ne.s32.totalorder %s95_s0, %s2800_s19  ;;  %p2806_p7 = scmp.lt.s32.totalorder %s2800_s19, %s2800_s19 }
  0x47   :  { %p2807_p8 = por %p2806_p7, %p2805_p6 }
  0x49   :  { %p2808_p9 = pnand %p2807_p8, %p2801_p5 }
  0x4b   :  { %2811 = shalt.err (!%p2808_p9)
}
  0x4c   :  { %s3213_s21 = smov 512   ;;  %s3214_s1 = smov 32  }
  0x4d   :  { %100 = dma.hbm_to_vmem [thread:$0]  %s3715_s5, 12800, %s95_s0, [#allocation12], %s3213_s21, %s3213_s21, %s3214_s1  }
  0x4e   :  { %s3215_s29 = smov [#allocation14]   ;;  %s2812_s25 = scalar_lea.hbm %s3717_s7, 24192 }
  0x4f   :  { %s116_s20 = sshll.u32 %s3215_s29, 4  ;;  %p2813_p10 = scmp.ne.s32.totalorder %s3717_s7, %s2812_s25  ;;  %s117_s20 = int_to_ptr.vmem [resolvable:$true] %s116_s20 }
  0x50   :  { %p2816_p11 = scmp.lt.u32.totalorder %s2812_s25, %s3717_s7 }
  0x52   :  { %p2818_p12 = pnand %p2816_p11, %p2813_p10 }
  0x54   :  { %2821 = shalt.err (!%p2818_p12)
}
  0x55   :  { %s2822_s30 = scalar_lea.vmem %s117_s20, 24192  ;;  %p2827_p0 = scmp.lt.s32.totalorder %s117_s20, %s117_s20 }
  0x56   :  { %p2823_p13 = scmp.ne.s32.totalorder %s117_s20, %s2822_s30  ;;  %p2828_p1 = scmp.lt.s32.totalorder %s2822_s30, %s2822_s30 }
  0x58   :  { %p2829_p2 = por %p2828_p1, %p2827_p0 }
  0x5a   :  { %p2830_p3 = pnand %p2829_p2, %p2823_p13 }
  0x5c   :  { %2833 = shalt.err (!%p2830_p3)
}
  0x5d   :  { %s3216_s5 = smov 384   ;;  %s3217_s0 = smov 24  }
  0x5e   :  { %122 = dma.hbm_to_vmem [thread:$0]  %s3717_s7, 24192, %s117_s20, [#allocation15], %s3216_s5, %s3216_s5, %s3217_s0  }
  0x5f   :  { %s3218_s27 = smov [#allocation17]   ;;  %s2834_s24 = scalar_lea.hbm %s3719_s9, 9728 }
  0x60   :  { %s138_s28 = sshll.u32 %s3218_s27, 4  ;;  %p2835_p4 = scmp.ne.s32.totalorder %s3719_s9, %s2834_s24  ;;  %s139_s28 = int_to_ptr.vmem [resolvable:$true] %s138_s28 }
  0x61   :  { %p2838_p5 = scmp.lt.u32.totalorder %s2834_s24, %s3719_s9 }
  0x63   :  { %p2840_p6 = pnand %p2838_p5, %p2835_p4 }
  0x65   :  { %2843 = shalt.err (!%p2840_p6)
}
  0x66   :  { %s2844_s19 = scalar_lea.vmem %s139_s28, 9728  ;;  %p2849_p8 = scmp.lt.s32.totalorder %s139_s28, %s139_s28 }
  0x67   :  { %p2845_p7 = scmp.ne.s32.totalorder %s139_s28, %s2844_s19  ;;  %p2850_p9 = scmp.lt.s32.totalorder %s2844_s19, %s2844_s19 }
  0x69   :  { %p2851_p10 = por %p2850_p9, %p2849_p8 }
  0x6b   :  { %p2852_p11 = pnand %p2851_p10, %p2845_p7 }
  0x6d   :  { %2855 = shalt.err (!%p2852_p11)
}
  0x6e   :  { %s3743_s7 = smov 256   ;;  %s3219_s5 = smov [#allocation20]  }
  0x6f   :  { %144 = dma.hbm_to_vmem [thread:$0]  %s3719_s9, 9728, %s139_s28, [#allocation18], %s3743_s7, %s3743_s7, %s3211_s2  }
  0x70   :  { %s160_s0 = sshll.u32 %s3219_s5, 4  ;;  %s3220_s21 = smov [#allocation23]   ;;  %s161_s0 = int_to_ptr.vmem [resolvable:$true] %s160_s0 }
  0x71   :  { %s182_s1 = sshll.u32 %s3220_s21, 4  ;;  %s2856_s22 = scalar_lea.hbm %s3721_s11, 3200  ;;  %s183_s1 = int_to_ptr.vmem [resolvable:$true] %s182_s1 }
  0x72   :  { %p2857_p12 = scmp.ne.s32.totalorder %s3721_s11, %s2856_s22  ;;  %p2860_p13 = scmp.lt.u32.totalorder %s2856_s22, %s3721_s11 }
  0x74   :  { %p2862_p0 = pnand %p2860_p13, %p2857_p12 }
  0x76   :  { %2865 = shalt.err (!%p2862_p0)
}
  0x77   :  { %s2866_s9 = scalar_lea.vmem %s161_s0, 3200  ;;  %p2871_p2 = scmp.lt.s32.totalorder %s161_s0, %s161_s0 }
  0x78   :  { %p2867_p1 = scmp.ne.s32.totalorder %s161_s0, %s2866_s9  ;;  %p2872_p3 = scmp.lt.s32.totalorder %s2866_s9, %s2866_s9 }
  0x7a   :  { %p2873_p4 = por %p2872_p3, %p2871_p2 }
  0x7c   :  { %p2874_p5 = pnand %p2873_p4, %p2867_p1 }
  0x7e   :  { %2877 = shalt.err (!%p2874_p5)
}
  0x7f   :  { %s3221_s2 = smov 128   ;;  %s3222_s28 = smov 8  }
  0x80   :  { %166 = dma.hbm_to_vmem [thread:$0]  %s3721_s11, 3200, %s161_s0, [#allocation21], %s3221_s2, %s3221_s2, %s3222_s28  }
  0x81   :  { %s2878_s26 = scalar_lea.hbm %s3723_s13, 1664 }
  0x82   :  { %p2879_p6 = scmp.ne.s32.totalorder %s3723_s13, %s2878_s26  ;;  %p2882_p7 = scmp.lt.u32.totalorder %s2878_s26, %s3723_s13 }
  0x84   :  { %p2884_p8 = pnand %p2882_p7, %p2879_p6 }
  0x86   :  { %2887 = shalt.err (!%p2884_p8)
}
  0x87   :  { %s2888_s22 = scalar_lea.vmem %s183_s1, 1664  ;;  %p2893_p10 = scmp.lt.s32.totalorder %s183_s1, %s183_s1 }
  0x88   :  { %p2889_p9 = scmp.ne.s32.totalorder %s183_s1, %s2888_s22  ;;  %p2894_p11 = scmp.lt.s32.totalorder %s2888_s22, %s2888_s22 }
  0x8a   :  { %p2895_p12 = por %p2894_p11, %p2893_p10 }
  0x8c   :  { %p2896_p13 = pnand %p2895_p12, %p2889_p9 }
  0x8e   :  { %2899 = shalt.err (!%p2896_p13)
}
  0x8f   :  { %188 = dma.hbm_to_vmem [thread:$0]  %s3723_s13, 1664, %s183_s1, [#allocation24], %s3221_s2, %s3221_s2, %s3222_s28  }
  0x90   :  { %s3223_s24 = smov [#allocation26]   ;;  %s3224_s23 = smov [#allocation29]  }
  0x91   :  { %s204_s25 = sshll.u32 %s3223_s24, 4  ;;  %s226_s30 = sshll.u32 %s3224_s23, 4  ;;  %s205_s25 = int_to_ptr.vmem [resolvable:$true] %s204_s25  ;;  %s227_s30 = int_to_ptr.vmem [resolvable:$true] %s226_s30 }
  0x92   :  { %s2900_s19 = scalar_lea.hbm %s3725_s15, 1280 }
  0x93   :  { %p2901_p0 = scmp.ne.s32.totalorder %s3725_s15, %s2900_s19  ;;  %p2904_p1 = scmp.lt.u32.totalorder %s2900_s19, %s3725_s15 }
  0x95   :  { %p2906_p2 = pnand %p2904_p1, %p2901_p0 }
  0x97   :  { %2909 = shalt.err (!%p2906_p2)
}
  0x98   :  { %s2910_s13 = scalar_lea.vmem %s205_s25, 1280  ;;  %p2915_p4 = scmp.lt.s32.totalorder %s205_s25, %s205_s25 }
  0x99   :  { %p2911_p3 = scmp.ne.s32.totalorder %s205_s25, %s2910_s13  ;;  %p2916_p5 = scmp.lt.s32.totalorder %s2910_s13, %s2910_s13 }
  0x9b   :  { %p2917_p6 = por %p2916_p5, %p2915_p4 }
  0x9d   :  { %p2918_p7 = pnand %p2917_p6, %p2911_p3 }
  0x9f   :  { %2921 = shalt.err (!%p2918_p7)
}
  0xa0   :  { %210 = dma.hbm_to_vmem [thread:$0]  %s3725_s15, 1280, %s205_s25, [#allocation27], %s3221_s2, %s3221_s2, %s3222_s28  }
  0xa1   :  { %s2922_s22 = scalar_lea.hbm %s3727_s17, 512 }
  0xa2   :  { %p2923_p8 = scmp.ne.s32.totalorder %s3727_s17, %s2922_s22  ;;  %p2926_p9 = scmp.lt.u32.totalorder %s2922_s22, %s3727_s17 }
  0xa4   :  { %p2928_p10 = pnand %p2926_p9, %p2923_p8 }
  0xa6   :  { %2931 = shalt.err (!%p2928_p10)
}
  0xa7   :  { %s2932_s9 = scalar_lea.vmem %s227_s30, 512  ;;  %p2937_p12 = scmp.lt.s32.totalorder %s227_s30, %s227_s30 }
  0xa8   :  { %p2933_p11 = scmp.ne.s32.totalorder %s227_s30, %s2932_s9  ;;  %p2938_p13 = scmp.lt.s32.totalorder %s2932_s9, %s2932_s9 }
  0xaa   :  { %p2939_p0 = por %p2938_p13, %p2937_p12 }
  0xac   :  { %p2940_p1 = pnand %p2939_p0, %p2933_p11 }
  0xae   :  { %2943 = shalt.err (!%p2940_p1)
}
  0xaf   :  { %232 = dma.hbm_to_vmem [thread:$0]  %s3727_s17, 512, %s227_s30, [#allocation30], %s3221_s2, %s3221_s2, %s3222_s28  }
  0xb0   :  { %s3225_s3 = smov [#allocation2]   ;;  %s3226_s7 = smov [#allocation7]  }
  0xb1   :  { %s40_s19 = sshll.u32 %s3225_s3, 4  ;;  %s63_s20 = sshll.u32 %s3226_s7, 4  ;;  %s41_s19 = int_to_ptr.vmem [resolvable:$true] %s40_s19  ;;  %s64_s20 = int_to_ptr.vmem [resolvable:$true] %s63_s20 }
  0xb2   :  { %s3744_s13 = sld [smem:[#allocation44_spill]] }
  0xb8   :  { %s2944_s1 = scalar_lea.hbm %s3744_s13, 256 }
  0xb9   :  { %p2945_p2 = scmp.ne.s32.totalorder %s3744_s13, %s2944_s1  ;;  %p2948_p3 = scmp.lt.u32.totalorder %s2944_s1, %s3744_s13 }
  0xbb   :  { %p2950_p4 = pnand %p2948_p3, %p2945_p2 }
  0xbd   :  { %2953 = shalt.err (!%p2950_p4)
}
  0xbe   :  { %s2954_s17 = scalar_lea.vmem %s41_s19, 256  ;;  %p2959_p6 = scmp.lt.s32.totalorder %s41_s19, %s41_s19 }
  0xbf   :  { %p2955_p5 = scmp.ne.s32.totalorder %s41_s19, %s2954_s17  ;;  %p2960_p7 = scmp.lt.s32.totalorder %s2954_s17, %s2954_s17 }
  0xc1   :  { %p2961_p8 = por %p2960_p7, %p2959_p6 }
  0xc3   :  { %p2962_p9 = pnand %p2961_p8, %p2955_p5 }
  0xc5   :  { %2965 = shalt.err (!%p2962_p9)
}
  0xc6   :  { %46 = dma.hbm_to_vmem [thread:$0]  %s3744_s13, 256, %s41_s19, [#allocation3], %s3221_s2, %s3221_s2, %s3222_s28  }
  0xc7   :  { %s3745_s23 = sld [smem:[#allocation46_spill]] }
  0xcd   :  { %s2966_s9 = scalar_lea.hbm %s3745_s23, 16 }
  0xce   :  { %p2967_p10 = scmp.ne.s32.totalorder %s3745_s23, %s2966_s9  ;;  %p2970_p11 = scmp.lt.u32.totalorder %s2966_s9, %s3745_s23 }
  0xd0   :  { %p2972_p12 = pnand %p2970_p11, %p2967_p10 }
  0xd2   :  { %2975 = shalt.err (!%p2972_p12)
}
  0xd3   :  { %s2976_s26 = scalar_lea.vmem %s64_s20, 16  ;;  %s2980_s5 = scalar_lea.vmem %s64_s20, 32 }
  0xd4   :  { %p2977_p13 = scmp.ne.s32.totalorder %s64_s20, %s2976_s26  ;;  %p2981_p0 = scmp.lt.s32.totalorder %s64_s20, %s64_s20 }
  0xd5   :  { %p2982_p1 = scmp.lt.s32.totalorder %s2980_s5, %s2976_s26 }
  0xd7   :  { %p2983_p2 = por %p2982_p1, %p2981_p0 }
  0xd9   :  { %p2984_p3 = pnand %p2983_p2, %p2977_p13 }
  0xdb   :  { %2987 = shalt.err (!%p2984_p3)
}
  0xdc   :  { %66 = dma.hbm_to_vmem [thread:$0]  %s3745_s23, 16, %s64_s20, [#allocation6]  }
  0xdd   :  { %s3227_s1 = smov [#allocation10]   ;;  %s3228_s27 = smov [#allocation13]  }
  0xde   :  { %s85_s21 = sshll.u32 %s3227_s1, 4  ;;  %s107_s29 = sshll.u32 %s3228_s27, 4  ;;  %s86_s21 = int_to_ptr.vmem [resolvable:$true] %s85_s21  ;;  %s108_s29 = int_to_ptr.vmem [resolvable:$true] %s107_s29 }
  0xdf   :  { %s2988_s30 = scalar_lea.hbm %s3714_s4, 32 }
  0xe0   :  { %p2989_p4 = scmp.ne.s32.totalorder %s3714_s4, %s2988_s30  ;;  %p2992_p5 = scmp.lt.u32.totalorder %s2988_s30, %s3714_s4 }
  0xe2   :  { %p2994_p6 = pnand %p2992_p5, %p2989_p4 }
  0xe4   :  { %2997 = shalt.err (!%p2994_p6)
}
  0xe5   :  { %s2998_s20 = scalar_lea.vmem %s86_s21, 32  ;;  %p3003_p8 = scmp.lt.s32.totalorder %s86_s21, %s86_s21 }
  0xe6   :  { %p2999_p7 = scmp.ne.s32.totalorder %s86_s21, %s2998_s20  ;;  %p3004_p9 = scmp.lt.s32.totalorder %s2998_s20, %s2998_s20 }
  0xe8   :  { %p3005_p10 = por %p3004_p9, %p3003_p8 }
  0xea   :  { %p3006_p11 = pnand %p3005_p10, %p2999_p7 }
  0xec   :  { %3009 = shalt.err (!%p3006_p11)
}
  0xed   :  { %88 = dma.hbm_to_vmem [thread:$0]  %s3714_s4, 32, %s86_s21, [#allocation9]  }
  0xee   :  { %s3010_s7 = scalar_lea.hbm %s3716_s6, 64 }
  0xef   :  { %p3011_p12 = scmp.ne.s32.totalorder %s3716_s6, %s3010_s7  ;;  %p3014_p13 = scmp.lt.u32.totalorder %s3010_s7, %s3716_s6 }
  0xf1   :  { %p3016_p0 = pnand %p3014_p13, %p3011_p12 }
  0xf3   :  { %3019 = shalt.err (!%p3016_p0)
}
  0xf4   :  { %s3020_s1 = scalar_lea.vmem %s108_s29, 64  ;;  %p3025_p2 = scmp.lt.s32.totalorder %s108_s29, %s108_s29 }
  0xf5   :  { %p3021_p1 = scmp.ne.s32.totalorder %s108_s29, %s3020_s1  ;;  %p3026_p3 = scmp.lt.s32.totalorder %s3020_s1, %s3020_s1 }
  0xf7   :  { %p3027_p4 = por %p3026_p3, %p3025_p2 }
  0xf9   :  { %p3028_p5 = pnand %p3027_p4, %p3021_p1 }
  0xfb   :  { %3031 = shalt.err (!%p3028_p5)
}
  0xfc   :  { %110 = dma.hbm_to_vmem [thread:$0]  %s3716_s6, 64, %s108_s29, [#allocation12]  }
  0xfd   :  { %s3229_s27 = smov [#allocation16]   ;;  %s3230_s17 = smov [#allocation19]  }
  0xfe   :  { %s129_s22 = sshll.u32 %s3229_s27, 4  ;;  %s151_s30 = sshll.u32 %s3230_s17, 4  ;;  %s130_s22 = int_to_ptr.vmem [resolvable:$true] %s129_s22  ;;  %s152_s30 = int_to_ptr.vmem [resolvable:$true] %s151_s30 }
  0xff   :  { %s3032_s24 = scalar_lea.hbm %s3718_s8, 48 }
 0x100   :  { %p3033_p6 = scmp.ne.s32.totalorder %s3718_s8, %s3032_s24  ;;  %p3036_p7 = scmp.lt.u32.totalorder %s3032_s24, %s3718_s8 }
 0x102   :  { %p3038_p8 = pnand %p3036_p7, %p3033_p6 }
 0x104   :  { %3041 = shalt.err (!%p3038_p8)
}
 0x105   :  { %s3042_s6 = scalar_lea.vmem %s130_s22, 48  ;;  %s3046_s29 = scalar_lea.vmem %s130_s22, 64 }
 0x106   :  { %p3043_p9 = scmp.ne.s32.totalorder %s130_s22, %s3042_s6  ;;  %p3047_p10 = scmp.lt.s32.totalorder %s130_s22, %s130_s22 }
 0x107   :  { %p3048_p11 = scmp.lt.s32.totalorder %s3046_s29, %s3042_s6 }
 0x109   :  { %p3049_p12 = por %p3048_p11, %p3047_p10 }
 0x10b   :  { %p3050_p13 = pnand %p3049_p12, %p3043_p9 }
 0x10d   :  { %3053 = shalt.err (!%p3050_p13)
}
 0x10e   :  { %132 = dma.hbm_to_vmem [thread:$0]  %s3718_s8, 48, %s130_s22, [#allocation15]  }
 0x10f   :  { %s3054_s5 = scalar_lea.hbm %s3720_s10, 32 }
 0x110   :  { %p3055_p0 = scmp.ne.s32.totalorder %s3720_s10, %s3054_s5  ;;  %p3058_p1 = scmp.lt.u32.totalorder %s3054_s5, %s3720_s10 }
 0x112   :  { %p3060_p2 = pnand %p3058_p1, %p3055_p0 }
 0x114   :  { %3063 = shalt.err (!%p3060_p2)
}
 0x115   :  { %s3064_s21 = scalar_lea.vmem %s152_s30, 32  ;;  %p3069_p4 = scmp.lt.s32.totalorder %s152_s30, %s152_s30 }
 0x116   :  { %p3065_p3 = scmp.ne.s32.totalorder %s152_s30, %s3064_s21  ;;  %p3070_p5 = scmp.lt.s32.totalorder %s3064_s21, %s3064_s21 }
 0x118   :  { %p3071_p6 = por %p3070_p5, %p3069_p4 }
 0x11a   :  { %p3072_p7 = pnand %p3071_p6, %p3065_p3 }
 0x11c   :  { %3075 = shalt.err (!%p3072_p7)
}
 0x11d   :  { %154 = dma.hbm_to_vmem [thread:$0]  %s3720_s10, 32, %s152_s30, [#allocation18]  }
 0x11e   :  { %s3231_s22 = smov [#allocation22]   ;;  %s3232_s11 = smov [#allocation25]  }
 0x11f   :  { %s173_s17 = sshll.u32 %s3231_s22, 4  ;;  %s195_s0 = sshll.u32 %s3232_s11, 4  ;;  %s174_s17 = int_to_ptr.vmem [resolvable:$true] %s173_s17  ;;  %s196_s0 = int_to_ptr.vmem [resolvable:$true] %s195_s0 }
 0x120   :  { %s3076_s20 = scalar_lea.hbm %s3722_s12, 16 }
 0x121   :  { %p3077_p8 = scmp.ne.s32.totalorder %s3722_s12, %s3076_s20  ;;  %p3080_p9 = scmp.lt.u32.totalorder %s3076_s20, %s3722_s12 }
 0x123   :  { %p3082_p10 = pnand %p3080_p9, %p3077_p8 }
 0x125   :  { %3085 = shalt.err (!%p3082_p10)
}
 0x126   :  { %s3086_s10 = scalar_lea.vmem %s174_s17, 16  ;;  %s3090_s30 = scalar_lea.vmem %s174_s17, 32 }
 0x127   :  { %p3087_p11 = scmp.ne.s32.totalorder %s174_s17, %s3086_s10  ;;  %p3091_p12 = scmp.lt.s32.totalorder %s174_s17, %s174_s17 }
 0x128   :  { %p3092_p13 = scmp.lt.s32.totalorder %s3090_s30, %s3086_s10 }
 0x12a   :  { %p3093_p0 = por %p3092_p13, %p3091_p12 }
 0x12c   :  { %p3094_p1 = pnand %p3093_p0, %p3087_p11 }
 0x12e   :  { %3097 = shalt.err (!%p3094_p1)
}
 0x12f   :  { %176 = dma.hbm_to_vmem [thread:$0]  %s3722_s12, 16, %s174_s17, [#allocation21]  }
 0x130   :  { %s3098_s5 = scalar_lea.hbm %s3724_s14, 16 }
 0x131   :  { %p3099_p2 = scmp.ne.s32.totalorder %s3724_s14, %s3098_s5  ;;  %p3102_p3 = scmp.lt.u32.totalorder %s3098_s5, %s3724_s14 }
 0x133   :  { %p3104_p4 = pnand %p3102_p3, %p3099_p2 }
 0x135   :  { %3107 = shalt.err (!%p3104_p4)
}
 0x136   :  { %s3108_s21 = scalar_lea.vmem %s196_s0, 16  ;;  %s3112_s8 = scalar_lea.vmem %s196_s0, 32 }
 0x137   :  { %p3109_p5 = scmp.ne.s32.totalorder %s196_s0, %s3108_s21  ;;  %p3113_p6 = scmp.lt.s32.totalorder %s196_s0, %s196_s0 }
 0x138   :  { %p3114_p7 = scmp.lt.s32.totalorder %s3112_s8, %s3108_s21 }
 0x13a   :  { %p3115_p8 = por %p3114_p7, %p3113_p6 }
 0x13c   :  { %p3116_p9 = pnand %p3115_p8, %p3109_p5 }
 0x13e   :  { %3119 = shalt.err (!%p3116_p9)
}
 0x13f   :  { %198 = dma.hbm_to_vmem [thread:$0]  %s3724_s14, 16, %s196_s0, [#allocation24]  }
 0x140   :  { %s3233_s22 = smov [#allocation28]   ;;  %s3234_s11 = smov [#allocation31]  }
 0x141   :  { %s217_s17 = sshll.u32 %s3233_s22, 4  ;;  %s239_s24 = sshll.u32 %s3234_s11, 4  ;;  %s218_s17 = int_to_ptr.vmem [resolvable:$true] %s217_s17  ;;  %s240_s24 = int_to_ptr.vmem [resolvable:$true] %s239_s24 }
 0x142   :  { %s3120_s23 = scalar_lea.hbm %s3726_s16, 16 }
 0x143   :  { %p3121_p10 = scmp.ne.s32.totalorder %s3726_s16, %s3120_s23  ;;  %p3124_p11 = scmp.lt.u32.totalorder %s3120_s23, %s3726_s16 }
 0x145   :  { %p3126_p12 = pnand %p3124_p11, %p3121_p10 }
 0x147   :  { %3129 = shalt.err (!%p3126_p12)
}
 0x148   :  { %s3130_s14 = scalar_lea.vmem %s218_s17, 16  ;;  %s3134_s0 = scalar_lea.vmem %s218_s17, 32 }
 0x149   :  { %p3131_p13 = scmp.ne.s32.totalorder %s218_s17, %s3130_s14  ;;  %p3135_p0 = scmp.lt.s32.totalorder %s218_s17, %s218_s17 }
 0x14a   :  { %p3136_p1 = scmp.lt.s32.totalorder %s3134_s0, %s3130_s14 }
 0x14c   :  { %p3137_p2 = por %p3136_p1, %p3135_p0 }
 0x14e   :  { %p3138_p3 = pnand %p3137_p2, %p3131_p13 }
 0x150   :  { %3141 = shalt.err (!%p3138_p3)
}
 0x151   :  { %220 = dma.hbm_to_vmem [thread:$0]  %s3726_s16, 16, %s218_s17, [#allocation27]  }
 0x152   :  { %s3142_s26 = scalar_lea.hbm %s3728_s18, 16 }
 0x153   :  { %p3143_p4 = scmp.ne.s32.totalorder %s3728_s18, %s3142_s26  ;;  %p3146_p5 = scmp.lt.u32.totalorder %s3142_s26, %s3728_s18 }
 0x155   :  { %p3148_p6 = pnand %p3146_p5, %p3143_p4 }
 0x157   :  { %3151 = shalt.err (!%p3148_p6)
}
 0x158   :  { %s3152_s4 = scalar_lea.vmem %s240_s24, 16  ;;  %s3156_s21 = scalar_lea.vmem %s240_s24, 32 }
 0x159   :  { %p3153_p7 = scmp.ne.s32.totalorder %s240_s24, %s3152_s4  ;;  %p3157_p8 = scmp.lt.s32.totalorder %s240_s24, %s240_s24 }
 0x15a   :  { %p3158_p9 = scmp.lt.s32.totalorder %s3156_s21, %s3152_s4 }
 0x15c   :  { %p3159_p10 = por %p3158_p9, %p3157_p8 }
 0x15e   :  { %p3160_p11 = pnand %p3159_p10, %p3153_p7 }
 0x160   :  { %3163 = shalt.err (!%p3160_p11)
}
 0x161   :  { %242 = dma.hbm_to_vmem [thread:$0]  %s3728_s18, 16, %s240_s24, [#allocation30]  }
 0x162   :  { %3186 = dma.done.wait [#allocation3], 256  }
 0x163   :  { %3187 = vsyncadd [#allocation3], 4294967040 }
 0x164   :  { %3188 = dma.done.wait [#allocation6], 80  }
 0x165   :  { %3189 = vsyncadd [#allocation6], 4294967216 }
 0x166   :  { %3190 = dma.done.wait [#allocation9], 1824  }
 0x167   :  { %3191 = vsyncadd [#allocation9], 4294965472 }
 0x168   :  { %3192 = dma.done.wait [#allocation12], 12864  }
 0x169   :  { %3193 = vsyncadd [#allocation12], 4294954432 }
 0x16a   :  { %3194 = dma.done.wait [#allocation15], 24240  }
 0x16b   :  { %3195 = vsyncadd [#allocation15], 4294943056 }
 0x16c   :  { %3196 = dma.done.wait [#allocation18], 9760  }
 0x16d   :  { %3197 = vsyncadd [#allocation18], 4294957536 }
 0x16e   :  { %3198 = dma.done.wait [#allocation21], 3216  }
 0x16f   :  { %3199 = vsyncadd [#allocation21], 4294964080 }
 0x170   :  { %3200 = dma.done.wait [#allocation24], 1680  }
 0x171   :  { %3201 = vsyncadd [#allocation24], 4294965616 }
 0x172   :  { %3202 = dma.done.wait [#allocation27], 1296  }
 0x173   :  { %3203 = vsyncadd [#allocation27], 4294966000 }
 0x174   :  { %3204 = dma.done.wait [#allocation30], 528  }
 0x175   :  { %3205 = vsyncadd [#allocation30], 4294966768  ;;  %v3235_v0 = vmov 2   ;;  %v3236_v1 = vmov 0   ;;  %v300_v2 = vld [vmem:[#allocation2] sm:$0xff]  ;;  %v367_v4 = vld [vmem:[#allocation8 + $0x18] sm:$0xff] }
 0x176   :  { %2742 = vset.pattern.permute.xlu1 %v3235_v0  ;;  %2740 = vset.pattern.permute.xlu0 %v3236_v1  ;;  %v365_v3 = vld [vmem:[#allocation8 + $0x8] sm:$0xff]  ;;  %v364_v6 = vld [vmem:[#allocation8] sm:$0xff]  ;;  %v366_v7 = vld [vmem:[#allocation8 + $0x10] sm:$0xff]  ;;  %v3237_v13 = vmov 1   ;;  %vm397_vm0 = vcmask 1041408   ;;  %v3238_v24 = vmov 0.0  }
 0x177   :  { %345 = vperm.xlu1 %2742, %v300_v2   ;;  %306 = vperm.xlu0 %2740, %v300_v2   ;;  %v2213_v5 = vpack.c.bf16 %v367_v4, %v365_v3  ;;  %v301_v8 = vld [vmem:[#allocation2 + $0x8] sm:$0xff]  ;;  %v2215_v9 = vpack.c.bf16 %v366_v7, %v364_v6  ;;  %v369_v10 = vld [vmem:[#allocation8 + $0x28] sm:$0xff]  ;;  %v368_v14 = vld [vmem:[#allocation8 + $0x20] sm:$0xff]  ;;  %vm390_vm1 = vcmask 408576   ;;  %vm611_vm2 = vcmask 588800   ;;  %s3241_s18 = smov [#allocation32]  }
 0x178   :  { %v371_v11 = vld [vmem:[#allocation8 + $0x38] sm:$0xff]  ;;  %v370_v15 = vld [vmem:[#allocation8 + $0x30] sm:$0xff]  ;;  %v373_v16 = vld [vmem:[#allocation8 + $0x48] sm:$0xff]  ;;  %468 = vmatprep.mubr.f32.mxu0 %v3238_v24  ;;  %vm994_vm3 = vcmask 949248   ;;  %vm1001_vm4 = vcmask 1043456   ;;  %vm3240_vm5 = vmmov 1  }
 0x179   :  { %2214 = vmatprep.subr.bf16.mxu0 %v2213_v5  ;;  %v2217_v12 = vpack.c.bf16 %v371_v11, %v369_v10  ;;  %v375_v17 = vld [vmem:[#allocation8 + $0x58] sm:$0xff]  ;;  %v2219_v18 = vpack.c.bf16 %v370_v15, %v368_v14  ;;  %v372_v20 = vld [vmem:[#allocation8 + $0x40] sm:$0xff]  ;;  %v374_v21 = vld [vmem:[#allocation8 + $0x50] sm:$0xff]  ;;  %vm1415_vm7 = vcmask 359424   ;;  %vm1727_vm8 = vcmask 818176   ;;  %s2024_s12 = sshll.u32 %s3241_s18, 4  ;;  %s2025_s12 = int_to_ptr.vmem [resolvable:$true] %s2024_s12 }
 0x17a   :  { %2216 = vmatpush1.bf16.msra.mxu0 %v2215_v9  ;;  %v2221_v19 = vpack.c.bf16 %v375_v17, %v373_v16  ;;  %v2223_v22 = vpack.c.bf16 %v374_v21, %v372_v20  ;;  %v377_v23 = vld [vmem:[#allocation8 + $0x68] sm:$0x3]  ;;  %v376_v25 = vld [vmem:[#allocation8 + $0x60] sm:$0x3]  ;;  %v492_v28 = vld [vmem:[#allocation11 + $0x18] sm:$0xff]  ;;  %vm1833_vm9 = vcmask 654336   ;;  %p3169_p13 = scmp.lt.s32.totalorder %s2025_s12, %s2025_s12 }
 0x17b   :  { %2743 = vset.pattern.permute.xlu1 %v3236_v1  ;;  %2741 = vset.pattern.permute.xlu0 %v3237_v13  ;;  %v490_v26 = vld [vmem:[#allocation11 + $0x8] sm:$0xff]  ;;  %v496_v30 = vld [vmem:[#allocation11 + $0x38] sm:$0xff]  ;;  %v489_v31 = vld [vmem:[#allocation11] sm:$0xff]  ;;  %vm1937_vm10 = vcmask 1045504   ;;  %vm1930_vm12 = vcmask 244736   ;;  %vm2016_vm13 = vcmask 64512  }
 0x17c   :  { %311 = vperm.xlu1 %2743, %v301_v8   ;;  %329 = vperm.xlu0 %2741, %v300_v2   ;;  %v494_v27 = vld [vmem:[#allocation11 + $0x28] sm:$0xff]  ;;  %v493_v32 = vld [vmem:[#allocation11 + $0x20] sm:$0xff]  ;;  %v2273_v33 = vpack.c.bf16 %v496_v30, %v492_v28  ;;  %vm2595_vm6 = vmpackc.low %vm1001_vm4, %vm3240_vm5  ;;  %s3164_s27 = scalar_lea.vmem %s2025_s12, 256 }
 0x17d   :  { %2218 = vmatprep.subr.bf16.mxu0 %v2217_v12  ;;  %v2225_v29 = vpack.c.bf16 %v494_v27, %v490_v26  ;;  %v2227_v34 = vpack.c.bf16 %v493_v32, %v489_v31  ;;  %v498_v35 = vld [vmem:[#allocation11 + $0x48] sm:$0xff]  ;;  %v497_v38 = vld [vmem:[#allocation11 + $0x40] sm:$0xff]  ;;  %vm2685_vm11 = vmpackc.low %vm1937_vm10, %vm3240_vm5  ;;  %p3165_p12 = scmp.ne.s32.totalorder %s2025_s12, %s3164_s27  ;;  %p3170_p0 = scmp.lt.s32.totalorder %s3164_s27, %s3164_s27 }
 0x17e   :  { %2220 = vmatpush1.bf16.msra.mxu0 %v2219_v18  ;;  %v502_v36 = vld [vmem:[#allocation11 + $0x68] sm:$0xff]  ;;  %v501_v39 = vld [vmem:[#allocation11 + $0x60] sm:$0xff] }
 0x17f   :  { %2222 = vmatprep.subr.bf16.mxu0 %v2221_v19  ;;  %2226 = vmatprep.subr.bf16.mxu1 %v2225_v29  ;;  %v2229_v37 = vpack.c.bf16 %v502_v36, %v498_v35  ;;  %v2231_v40 = vpack.c.bf16 %v501_v39, %v497_v38  ;;  %v506_v41 = vld [vmem:[#allocation11 + $0x88] sm:$0xff]  ;;  %v505_v44 = vld [vmem:[#allocation11 + $0x80] sm:$0xff]  ;;  %v314_v29 = vlaneseq  ;;  %p3171_p1 = por %p3170_p0, %p3169_p13 }
 0x180   :  { %2744 = vset.pattern.permute.xlu1 %v3237_v13  ;;  %2745 = vset.pattern.permute.xlu0 %v3235_v0  ;;  %v510_v42 = vld [vmem:[#allocation11 + $0xa8] sm:$0xff]  ;;  %v509_v45 = vld [vmem:[#allocation11 + $0xa0] sm:$0xff] }
 0x181   :  { %333 = vperm.xlu1 %2744, %v301_v8   ;;  %349 = vperm.xlu0 %2745, %v301_v8   ;;  %v2233_v43 = vpack.c.bf16 %v510_v42, %v506_v41  ;;  %v2235_v46 = vpack.c.bf16 %v509_v45, %v505_v44  ;;  %v514_v47 = vld [vmem:[#allocation11 + $0xc8] sm:$0xff]  ;;  %v513_v50 = vld [vmem:[#allocation11 + $0xc0] sm:$0xff]  ;;  %v3599_v30 = vshrl.u32 %v314_v29, 7  ;;  %v535_v29 = vld [vmem:[#allocation11 + $0x170] sm:$0xff]  ;;  %p3172_p2 = pnand %p3171_p1, %p3165_p12 }
 0x182   :  { %2224 = vmatpush1.bf16.msra.mxu0 %v2223_v22  ;;  %2228 = vmatpush1.bf16.msra.mxu1 %v2227_v34  ;;  %v518_v48 = vld [vmem:[#allocation11 + $0xe8] sm:$0xff]  ;;  %v517_v51 = vld [vmem:[#allocation11 + $0xe0] sm:$0xff] }
 0x183   :  { %2046 = vmatprep.subr.msk.mxu0 %vm397_vm0, %v377_v23  ;;  %2230 = vmatprep.subr.bf16.mxu1 %v2229_v37  ;;  %v2237_v49 = vpack.c.bf16 %v518_v48, %v514_v47  ;;  %v522_v52 = vld [vmem:[#allocation11 + $0x108] sm:$0xff]  ;;  %v2239_v54 = vpack.c.bf16 %v517_v51, %v513_v50  ;;  %v521_v56 = vld [vmem:[#allocation11 + $0x100] sm:$0xff]  ;;  %v3602_v31 = vsub.s32 0, %v3599_v30  ;;  %v3606_v34 = vsub.s32 2, %v3599_v30 }
 0x184   :  { %v526_v53 = vld [vmem:[#allocation11 + $0x128] sm:$0xff]  ;;  %v525_v57 = vld [vmem:[#allocation11 + $0x120] sm:$0xff]  ;;  %v3609_v35 = vsub.s32 1, %v3599_v30 }
 0x185   :  { %v2241_v55 = vpack.c.bf16 %v526_v53, %v522_v52  ;;  %v530_v58 = vld [vmem:[#allocation11 + $0x148] sm:$0xff]  ;;  %v2243_v60 = vpack.c.bf16 %v525_v57, %v521_v56  ;;  %v529_v62 = vld [vmem:[#allocation11 + $0x140] sm:$0xff]  ;;  %v491_v53 = vld [vmem:[#allocation11 + $0x10] sm:$0xff] }
 0x186   :  { %2047 = vmatpush1.msk.msra.mxu0 %vm397_vm0, %v376_v25  ;;  %2232 = vmatpush1.bf16.msra.mxu1 %v2231_v40  ;;  %v534_v59 = vld [vmem:[#allocation11 + $0x168] sm:$0xff]  ;;  %v533_v63 = vld [vmem:[#allocation11 + $0x160] sm:$0xff]  ;;  %v500_v57 = vld [vmem:[#allocation11 + $0x58] sm:$0xff] }
 0x187   :  { %2274 = vmatprep.subr.bf16.mxu0 %v2273_v33  ;;  %2234 = vmatprep.subr.bf16.mxu1 %v2233_v43  ;;  %v2245_v61 = vpack.c.bf16 %v534_v59, %v530_v58  ;;  %v538_v0 = vld [vmem:[#allocation11 + $0x188] sm:$0xff]  ;;  %v2247_v2 = vpack.c.bf16 %v533_v63, %v529_v62  ;;  %v537_v4 = vld [vmem:[#allocation11 + $0x180] sm:$0xff]  ;;  %v504_v58 = vld [vmem:[#allocation11 + $0x78] sm:$0xff] }
 0x188   :  { %v542_v1 = vld [vmem:[#allocation11 + $0x1a8] sm:$0xff]  ;;  %v541_v5 = vld [vmem:[#allocation11 + $0x1a0] sm:$0xff]  ;;  %v2277_v63 = vpack.c.bf16 %v504_v58, %v500_v57  ;;  %v567_v57 = vld [vmem:[#allocation11 + $0x270] sm:$0xff] }
 0x189   :  { %v2249_v3 = vpack.c.bf16 %v542_v1, %v538_v0  ;;  %v546_v6 = vld [vmem:[#allocation11 + $0x1c8] sm:$0xff]  ;;  %v2251_v8 = vpack.c.bf16 %v541_v5, %v537_v4  ;;  %v545_v10 = vld [vmem:[#allocation11 + $0x1c0] sm:$0xff]  ;;  %v499_v1 = vld [vmem:[#allocation11 + $0x50] sm:$0xff] }
 0x18a   :  { %2236 = vmatpush1.bf16.msra.mxu1 %v2235_v46  ;;  %v550_v7 = vld [vmem:[#allocation11 + $0x1e8] sm:$0xff]  ;;  %v549_v11 = vld [vmem:[#allocation11 + $0x1e0] sm:$0xff]  ;;  %v512_v4 = vld [vmem:[#allocation11 + $0xb8] sm:$0xff] }
 0x18b   :  { %2238 = vmatprep.subr.bf16.mxu1 %v2237_v49  ;;  %v2253_v9 = vpack.c.bf16 %v550_v7, %v546_v6  ;;  %v554_v12 = vld [vmem:[#allocation11 + $0x208] sm:$0xff]  ;;  %v2255_v14 = vpack.c.bf16 %v549_v11, %v545_v10  ;;  %v553_v16 = vld [vmem:[#allocation11 + $0x200] sm:$0xff]  ;;  %v511_v10 = vld [vmem:[#allocation11 + $0xb0] sm:$0xff] }
 0x18c   :  { %v558_v13 = vld [vmem:[#allocation11 + $0x228] sm:$0xff]  ;;  %v557_v17 = vld [vmem:[#allocation11 + $0x220] sm:$0xff]  ;;  %v516_v11 = vld [vmem:[#allocation11 + $0xd8] sm:$0xff] }
 0x18d   :  { %v2257_v15 = vpack.c.bf16 %v558_v13, %v554_v12  ;;  %v562_v18 = vld [vmem:[#allocation11 + $0x248] sm:$0xff]  ;;  %v2259_v20 = vpack.c.bf16 %v557_v17, %v553_v16  ;;  %v561_v22 = vld [vmem:[#allocation11 + $0x240] sm:$0xff]  ;;  %v520_v12 = vld [vmem:[#allocation11 + $0xf8] sm:$0xff] }
 0x18e   :  { %2240 = vmatpush1.bf16.msra.mxu1 %v2239_v54  ;;  %v566_v19 = vld [vmem:[#allocation11 + $0x268] sm:$0xff]  ;;  %v565_v23 = vld [vmem:[#allocation11 + $0x260] sm:$0xff]  ;;  %v495_v54 = vld [vmem:[#allocation11 + $0x30] sm:$0xff] }
 0x18f   :  { %2242 = vmatprep.subr.bf16.mxu1 %v2241_v55  ;;  %v2261_v21 = vpack.c.bf16 %v566_v19, %v562_v18  ;;  %v570_v25 = vld [vmem:[#allocation11 + $0x288] sm:$0xff]  ;;  %v2263_v27 = vpack.c.bf16 %v565_v23, %v561_v22  ;;  %v519_v16 = vld [vmem:[#allocation11 + $0xf0] sm:$0xff]  ;;  %v524_v17 = vld [vmem:[#allocation11 + $0x118] sm:$0xff] }
 0x190   :  { %v574_v26 = vld [vmem:[#allocation11 + $0x2a8] sm:$0xff]  ;;  %v528_v18 = vld [vmem:[#allocation11 + $0x138] sm:$0xff]  ;;  %v527_v22 = vld [vmem:[#allocation11 + $0x130] sm:$0xff] }
 0x191   :  { %v2265_v28 = vpack.c.bf16 %v574_v26, %v570_v25  ;;  %v302_v32 = vld [vmem:[#allocation5] sm:$0x7]  ;;  %v2045_v41 = vld [vmem:[#allocation7] ss:$0 sm:$0xff]  ;;  %v532_v23 = vld [vmem:[#allocation11 + $0x158] sm:$0xff] }
 0x192   :  { %2244 = vmatpush1.bf16.msra.mxu1 %v2243_v60  ;;  %v317_v33 = vrot.slane %v302_v32, %v3602_v31  ;;  %v355_v39 = vrot.slane %v302_v32, %v3606_v34  ;;  %v339_v40 = vrot.slane %v302_v32, %v3609_v35  ;;  %v536_v25 = vld [vmem:[#allocation11 + $0x178] sm:$0xff] }
 0x193   :  { %2246 = vmatprep.subr.bf16.mxu1 %v2245_v61  ;;  %v2275_v61 = vpack.c.bf16 %v495_v54, %v491_v53  ;;  %v540_v32 = vld [vmem:[#allocation11 + $0x198] sm:$0xff] }
 0x194   :  { %v568_v53 = vld [vmem:[#allocation11 + $0x278] sm:$0xff] }
 0x195   :  { %v572_v58 = vld [vmem:[#allocation11 + $0x298] sm:$0xff] }
 0x196   :  { %2248 = vmatpush1.bf16.msra.mxu1 %v2247_v2  ;;  %v503_v2 = vld [vmem:[#allocation11 + $0x70] sm:$0xff] }
 0x197   :  { %2250 = vmatprep.subr.bf16.mxu1 %v2249_v3  ;;  %v508_v3 = vld [vmem:[#allocation11 + $0x98] sm:$0xff]  ;;  %v2279_v6 = vpack.c.bf16 %v503_v2, %v499_v1  ;;  %v575_v2 = vld [vmem:[#allocation11 + $0x2b0] sm:$0xff] }
 0x19a   :  { %2252 = vmatpush1.bf16.msra.mxu1 %v2251_v8  ;;  %v2281_v8 = vpack.c.bf16 %v512_v4, %v508_v3  ;;  %v578_v4 = vld [vmem:[#allocation11 + $0x2c8] sm:$0xff] }
 0x19b   :  { %2254 = vmatprep.subr.bf16.mxu1 %v2253_v9  ;;  %v507_v9 = vld [vmem:[#allocation11 + $0x90] sm:$0xff] }
 0x19c   :  { %v2283_v13 = vpack.c.bf16 %v511_v10, %v507_v9  ;;  %v577_v9 = vld [vmem:[#allocation11 + $0x2c0] sm:$0xff] }
 0x19d   :  { %v581_v10 = vld [vmem:[#allocation11 + $0x2e0] sm:$0xff] }
 0x19e   :  { %2256 = vmatpush1.bf16.msra.mxu1 %v2255_v14  ;;  %v2285_v14 = vpack.c.bf16 %v520_v12, %v516_v11  ;;  %v2271_v12 = vpack.c.bf16 %v581_v10, %v577_v9 }
 0x19f   :  { %2258 = vmatprep.subr.bf16.mxu1 %v2257_v15  ;;  %v515_v15 = vld [vmem:[#allocation11 + $0xd0] sm:$0xff] }
 0x1a0   :  { %v2287_v19 = vpack.c.bf16 %v519_v16, %v515_v15  ;;  %v586_v16 = vld [vmem:[#allocation11 + $0x308] sm:$0xff] }
 0x1a2   :  { %2260 = vmatpush1.bf16.msra.mxu1 %v2259_v20  ;;  %v2289_v20 = vpack.c.bf16 %v528_v18, %v524_v17  ;;  %v588_v17 = vld [vmem:[#allocation11 + $0x318] sm:$0xff]  ;;  %v585_v18 = vld [vmem:[#allocation11 + $0x300] sm:$0xff] }
 0x1a3   :  { %2262 = vmatprep.subr.bf16.mxu1 %v2261_v21  ;;  %v523_v21 = vld [vmem:[#allocation11 + $0x110] sm:$0xff] }
 0x1a4   :  { %v2291_v26 = vpack.c.bf16 %v527_v22, %v523_v21  ;;  %v792_v21 = vld [vmem:[#allocation14 + $0x20] sm:$0xff] }
 0x1a6   :  { %2264 = vmatpush1.bf16.msra.mxu1 %v2263_v27  ;;  %v2293_v27 = vpack.c.bf16 %v536_v25, %v532_v23  ;;  %v838_v23 = vld [vmem:[#allocation14 + $0x190] sm:$0xff]  ;;  %v841_v25 = vld [vmem:[#allocation14 + $0x1a8] sm:$0xff] }
 0x1a7   :  { %2266 = vmatprep.subr.bf16.mxu1 %v2265_v28  ;;  %v531_v28 = vld [vmem:[#allocation11 + $0x150] sm:$0xff] }
 0x1f6   :  { %v307_v36 = vpop.permute.xlu0 %306  ;;  %v346_v37 = vpop.permute.xlu1 %345 }
 0x1f7   :  { %v318_v38 = vmul.f32 %v317_v33, %v307_v36  ;;  %v356_v45 = vmul.f32 %v355_v39, %v346_v37  ;;  %v2295_v36 = vpack.c.bf16 %v535_v29, %v531_v28 }
 0x1f9   :  { %v326_v44 = vadd.f32 %v2045_v41, %v318_v38  ;;  %v539_v38 = vld [vmem:[#allocation11 + $0x190] sm:$0xff] }
 0x1fb   :  { %v330_v42 = vpop.permute.xlu0 %329  ;;  %v312_v43 = vpop.permute.xlu1 %311 }
 0x1fc   :  { %v340_v46 = vmul.f32 %v339_v40, %v330_v42  ;;  %v319_v47 = vmul.f32 %v317_v33, %v312_v43  ;;  %v544_v33 = vld [vmem:[#allocation11 + $0x1b8] sm:$0xff] }
 0x1fd   :  { %v2297_v37 = vpack.c.bf16 %v544_v33, %v540_v32 }
 0x1fe   :  { %v342_v48 = vadd.f32 %v340_v46, %v326_v44  ;;  %v327_v49 = vadd.f32 %v2045_v41, %v319_v47  ;;  %v552_v41 = vld [vmem:[#allocation11 + $0x1f8] sm:$0xff]  ;;  %v547_v44 = vld [vmem:[#allocation11 + $0x1d0] sm:$0xff] }
 0x1ff   :  { %v556_v46 = vld [vmem:[#allocation11 + $0x218] sm:$0xff] }
 0x200   :  { %v358_v50 = vadd.f32 %v356_v45, %v342_v48  ;;  %v334_v51 = vpop.permute.xlu1 %333  ;;  %v350_v52 = vpop.permute.xlu0 %349  ;;  %v551_v45 = vld [vmem:[#allocation11 + $0x1f0] sm:$0xff]  ;;  %v560_v47 = vld [vmem:[#allocation11 + $0x238] sm:$0xff] }
 0x201   :  { %v341_v55 = vmul.f32 %v339_v40, %v334_v51  ;;  %v357_v56 = vmul.f32 %v355_v39, %v350_v52  ;;  %v543_v39 = vld [vmem:[#allocation11 + $0x1b0] sm:$0xff]  ;;  %v548_v40 = vld [vmem:[#allocation11 + $0x1d8] sm:$0xff]  ;;  %v2303_v48 = vpack.c.bf16 %v551_v45, %v547_v44 }
 0x202   :  { %v360_v59 = vmul.f32 0.01, %v358_v50  ;;  %v2299_v42 = vpack.c.bf16 %v543_v39, %v539_v38  ;;  %v2301_v43 = vpack.c.bf16 %v552_v41, %v548_v40  ;;  %v559_v51 = vld [vmem:[#allocation11 + $0x230] sm:$0xff]  ;;  %v564_v52 = vld [vmem:[#allocation11 + $0x258] sm:$0xff]  ;;  %v788_v38 = vld [vmem:[#allocation14] sm:$0xff] }
 0x203   :  { %v343_v60 = vadd.f32 %v341_v55, %v327_v49  ;;  %v2305_v49 = vpack.c.bf16 %v560_v47, %v556_v46  ;;  %v2309_v55 = vpack.c.bf16 %v568_v53, %v564_v52  ;;  %v791_v39 = vld [vmem:[#allocation14 + $0x18] sm:$0xff]  ;;  %v798_v45 = vld [vmem:[#allocation14 + $0x50] sm:$0xff]  ;;  %v844_v46 = vld [vmem:[#allocation14 + $0x1c0] sm:$0xff] }
 0x204   :  { %v362_v62 = vmax.f32 %v358_v50, %v360_v59  ;;  %v555_v50 = vld [vmem:[#allocation11 + $0x210] sm:$0xff]  ;;  %v576_v59 = vld [vmem:[#allocation11 + $0x2b8] sm:$0xff]  ;;  %v2323_v52 = vpack.c.bf16 %v791_v39, %v788_v38 }
 0x205   :  { %v359_v0 = vadd.f32 %v357_v56, %v343_v60  ;;  %v2307_v54 = vpack.c.bf16 %v559_v51, %v555_v50  ;;  %v563_v56 = vld [vmem:[#allocation11 + $0x250] sm:$0xff]  ;;  %v795_v41 = vld [vmem:[#allocation14 + $0x38] sm:$0xff] }
 0x206   :  { %2048 = vmatmul.mubr.msk.f32.vlgmr.msra.gmra.mrb[0].mxu0 %vm390_vm1, %v362_v62  ;;  %v2311_v60 = vpack.c.bf16 %v567_v57, %v563_v56  ;;  %v569_v62 = vld [vmem:[#allocation11 + $0x280] sm:$0xff]  ;;  %v2325_v56 = vpack.c.bf16 %v798_v45, %v795_v41  ;;  %v794_v57 = vld [vmem:[#allocation14 + $0x30] sm:$0xff] }
 0x207   :  { %v361_v5 = vmul.f32 0.01, %v359_v0  ;;  %474 = vmatprep.mubr.f32.mxu0 %v3238_v24  ;;  %2276 = vmatpush1.bf16.msra.mxu0 %v2275_v61  ;;  %v2313_v61 = vpack.c.bf16 %v576_v59, %v572_v58  ;;  %v847_v47 = vld [vmem:[#allocation14 + $0x1d8] sm:$0xff]  ;;  %v797_v58 = vld [vmem:[#allocation14 + $0x48] sm:$0xff]  ;;  %v868_v45 = vld [vmem:[#allocation14 + $0x280] sm:$0xff] }
 0x208   :  { %2278 = vmatprep.subr.bf16.mxu0 %v2277_v63  ;;  %v573_v63 = vld [vmem:[#allocation11 + $0x2a0] sm:$0xff]  ;;  %v2449_v59 = vpack.c.bf16 %v847_v47, %v844_v46 }
 0x209   :  { %v363_v7 = vmax.f32 %v359_v0, %v361_v5  ;;  %v571_v0 = vld [vmem:[#allocation11 + $0x290] sm:$0xff]  ;;  %v2267_v1 = vpack.c.bf16 %v573_v63, %v569_v62  ;;  %v582_v5 = vld [vmem:[#allocation11 + $0x2e8] sm:$0xff]  ;;  %v799_v63 = vld [vmem:[#allocation14 + $0x58] sm:$0xff] }
 0x20a   :  { %v2315_v3 = vpack.c.bf16 %v575_v2, %v571_v0  ;;  %v796_v62 = vld [vmem:[#allocation14 + $0x40] sm:$0xff]  ;;  %v850_v2 = vld [vmem:[#allocation14 + $0x1f0] sm:$0xff]  ;;  %v871_v46 = vld [vmem:[#allocation14 + $0x298] sm:$0xff] }
 0x20b   :  { %2049 = vmatmul.mubr.msk.f32.gmra.mrb[2].mxu0 %vm390_vm1, %v363_v7  ;;  %2268 = vmatpush1.bf16.msra.mxu1 %v2267_v1  ;;  %v2269_v7 = vpack.c.bf16 %v582_v5, %v578_v4  ;;  %v804_v1 = vld [vmem:[#allocation14 + $0x80] sm:$0xff]  ;;  %v2451_v9 = vpack.c.bf16 %v799_v63, %v796_v62  ;;  %v831_v62 = vld [vmem:[#allocation14 + $0x158] sm:$0xff]  ;;  %v834_v63 = vld [vmem:[#allocation14 + $0x170] sm:$0xff] }
 0x20c   :  { %2280 = vmatpush1.bf16.msra.mxu0 %v2279_v6  ;;  %v580_v6 = vld [vmem:[#allocation11 + $0x2d8] sm:$0xff] }
 0x20d   :  { %2282 = vmatprep.subr.bf16.mxu0 %v2281_v8  ;;  %v584_v8 = vld [vmem:[#allocation11 + $0x2f8] sm:$0xff]  ;;  %2270 = vmatprep.subr.bf16.mxu1 %v2269_v7  ;;  %v800_v7 = vld [vmem:[#allocation14 + $0x60] sm:$0xff] }
 0x20e   :  { %v2317_v11 = vpack.c.bf16 %v584_v8, %v580_v6  ;;  %v2327_v6 = vpack.c.bf16 %v797_v58, %v794_v57  ;;  %v803_v8 = vld [vmem:[#allocation14 + $0x78] sm:$0xff] }
 0x20f   :  { %2272 = vmatpush1.bf16.msra.mxu1 %v2271_v12 }
 0x210   :  { %2284 = vmatpush1.bf16.msra.mxu0 %v2283_v13  ;;  %v579_v13 = vld [vmem:[#allocation11 + $0x2d0] sm:$0xff]  ;;  %666 = vmatprep.subr.mxu1 %v586_v16  ;;  %v856_v16 = vld [vmem:[#allocation14 + $0x220] sm:$0xff] }
 0x211   :  { %2286 = vmatprep.subr.bf16.mxu0 %v2285_v14  ;;  %v583_v14 = vld [vmem:[#allocation11 + $0x2f0] sm:$0xff] }
 0x212   :  { %v2319_v15 = vpack.c.bf16 %v583_v14, %v579_v13  ;;  %v802_v13 = vld [vmem:[#allocation14 + $0x70] sm:$0xff]  ;;  %v805_v14 = vld [vmem:[#allocation14 + $0x88] sm:$0xff] }
 0x213   :  { %667 = vmatpush1.msra.mxu1 %v585_v18  ;;  %v2331_v18 = vpack.c.bf16 %v803_v8, %v800_v7  ;;  %v836_v8 = vld [vmem:[#allocation14 + $0x180] sm:$0xff] }
 0x214   :  { %2288 = vmatpush1.bf16.msra.mxu0 %v2287_v19  ;;  %v587_v19 = vld [vmem:[#allocation11 + $0x310] sm:$0xff] }
 0x215   :  { %2290 = vmatprep.subr.bf16.mxu0 %v2289_v20  ;;  %v789_v20 = vld [vmem:[#allocation14 + $0x8] sm:$0xff] }
 0x216   :  { %v2321_v22 = vpack.c.bf16 %v792_v21, %v789_v20  ;;  %v809_v20 = vld [vmem:[#allocation14 + $0xa8] sm:$0xff]  ;;  %v2455_v21 = vpack.c.bf16 %v805_v14, %v802_v13  ;;  %v842_v14 = vld [vmem:[#allocation14 + $0x1b0] sm:$0xff] }
 0x218   :  { %2292 = vmatpush1.bf16.msra.mxu0 %v2291_v26  ;;  %2322 = vmatprep.subr.bf16.mxu1 %v2321_v22  ;;  %v2445_v26 = vpack.c.bf16 %v841_v25, %v838_v23  ;;  %v813_v23 = vld [vmem:[#allocation14 + $0xc8] sm:$0xff] }
 0x219   :  { %2294 = vmatprep.subr.bf16.mxu0 %v2293_v27  ;;  %v378_v27 = vld [vmem:[#allocation10] sm:$0x3] }
 0x21a   :  { %v383_v28 = vrot.slane %v378_v27, %v3602_v31  ;;  %v387_v29 = vrot.slane %v378_v27, %v3609_v35  ;;  %v811_v27 = vld [vmem:[#allocation14 + $0xb8] sm:$0xff] }
 0x21c   :  { %2296 = vmatpush1.bf16.msra.mxu0 %v2295_v36 }
 0x21d   :  { %2298 = vmatprep.subr.bf16.mxu0 %v2297_v37 }
 0x220   :  { %2300 = vmatpush1.bf16.msra.mxu0 %v2299_v42  ;;  %v790_v42 = vld [vmem:[#allocation14 + $0x10] sm:$0xff] }
 0x221   :  { %2302 = vmatprep.subr.bf16.mxu0 %v2301_v43  ;;  %v793_v43 = vld [vmem:[#allocation14 + $0x28] sm:$0xff] }
 0x222   :  { %v2447_v53 = vpack.c.bf16 %v793_v43, %v790_v42  ;;  %v814_v42 = vld [vmem:[#allocation14 + $0xd0] sm:$0xff]  ;;  %v817_v43 = vld [vmem:[#allocation14 + $0xe8] sm:$0xff] }
 0x224   :  { %2304 = vmatpush1.bf16.msra.mxu0 %v2303_v48 }
 0x225   :  { %2306 = vmatprep.subr.bf16.mxu0 %v2305_v49 }
 0x228   :  { %2308 = vmatpush1.bf16.msra.mxu0 %v2307_v54 }
 0x229   :  { %2310 = vmatprep.subr.bf16.mxu0 %v2309_v55 }
 0x22c   :  { %2312 = vmatpush1.bf16.msra.mxu0 %v2311_v60 }
 0x22d   :  { %2314 = vmatprep.subr.bf16.mxu0 %v2313_v61  ;;  %v801_v61 = vld [vmem:[#allocation14 + $0x68] sm:$0xff] }
 0x22e   :  { %v2329_v10 = vpack.c.bf16 %v804_v1, %v801_v61  ;;  %v827_v61 = vld [vmem:[#allocation14 + $0x138] sm:$0xff]  ;;  %v2349_v1 = vpack.c.bf16 %v834_v63, %v831_v62  ;;  %v878_v63 = vld [vmem:[#allocation14 + $0x2d0] sm:$0xff] }
 0x22f   :  { %v883_v62 = vld [vmem:[#allocation14 + $0x2f8] sm:$0xff] }
 0x230   :  { %2316 = vmatpush1.bf16.msra.mxu0 %v2315_v3  ;;  %v853_v3 = vld [vmem:[#allocation14 + $0x208] sm:$0xff] }
 0x231   :  { %2318 = vmatprep.subr.bf16.mxu0 %v2317_v11  ;;  %v807_v11 = vld [vmem:[#allocation14 + $0x98] sm:$0xff]  ;;  %v2453_v12 = vpack.c.bf16 %v853_v3, %v850_v2  ;;  %v830_v2 = vld [vmem:[#allocation14 + $0x150] sm:$0xff]  ;;  %v833_v3 = vld [vmem:[#allocation14 + $0x168] sm:$0xff] }
 0x234   :  { %2320 = vmatpush1.bf16.msra.mxu0 %v2319_v15  ;;  %v810_v15 = vld [vmem:[#allocation14 + $0xb0] sm:$0xff] }
 0x235   :  { %743 = vmatprep.subr.mxu0 %v588_v17  ;;  %v859_v17 = vld [vmem:[#allocation14 + $0x238] sm:$0xff]  ;;  %v2333_v22 = vpack.c.bf16 %v810_v15, %v807_v11  ;;  %v846_v11 = vld [vmem:[#allocation14 + $0x1d0] sm:$0xff]  ;;  %v845_v15 = vld [vmem:[#allocation14 + $0x1c8] sm:$0xff] }
 0x236   :  { %v2457_v25 = vpack.c.bf16 %v859_v17, %v856_v16  ;;  %v849_v16 = vld [vmem:[#allocation14 + $0x1e8] sm:$0xff]  ;;  %v852_v17 = vld [vmem:[#allocation14 + $0x200] sm:$0xff] }
 0x238   :  { %744 = vmatpush1.msra.mxu0 %v587_v19  ;;  %v806_v19 = vld [vmem:[#allocation14 + $0x90] sm:$0xff] }
 0x239   :  { %2446 = vmatprep.subr.bf16.mxu0 %v2445_v26  ;;  %v808_v26 = vld [vmem:[#allocation14 + $0xa0] sm:$0xff] }
 0x23a   :  { %v2459_v38 = vpack.c.bf16 %v811_v27, %v808_v26  ;;  %v854_v27 = vld [vmem:[#allocation14 + $0x210] sm:$0xff] }
 0x2d9   :  { %v470_v32 = vpop.f32.mrb[0].mxu0 }
 0x2da   :  { %v471_v33 = vadd.f32 %v470_v32, %v383_v28  ;;  %v472_v36 = vpop.f32.mrb[1].mxu0  ;;  %v865_v32 = vld [vmem:[#allocation14 + $0x268] sm:$0xff] }
 0x2db   :  { %v473_v37 = vadd.f32 %v472_v36, %v387_v29  ;;  %v812_v36 = vld [vmem:[#allocation14 + $0xc0] sm:$0xff] }
 0x2dc   :  { %v481_v40 = vmul.f32 0.01, %v471_v33 }
 0x2dd   :  { %v482_v44 = vmul.f32 0.01, %v473_v37 }
 0x2de   :  { %v476_v48 = vpop.f32.mrb[2].mxu0  ;;  %v485_v54 = vmax.f32 %v471_v33, %v481_v40  ;;  %v2335_v33 = vpack.c.bf16 %v809_v20, %v806_v19  ;;  %v819_v40 = vld [vmem:[#allocation14 + $0xf8] sm:$0xff]  ;;  %v2361_v19 = vpack.c.bf16 %v852_v17, %v849_v16  ;;  %v848_v20 = vld [vmem:[#allocation14 + $0x1e0] sm:$0xff] }
 0x2df   :  { %v477_v49 = vadd.f32 %v476_v48, %v383_v28  ;;  %v478_v50 = vpop.f32.mrb[3].mxu0  ;;  %v486_v51 = vmax.f32 %v473_v37, %v482_v44  ;;  %v816_v28 = vld [vmem:[#allocation14 + $0xe0] sm:$0xff]  ;;  %v815_v37 = vld [vmem:[#allocation14 + $0xd8] sm:$0xff]  ;;  %v822_v44 = vld [vmem:[#allocation14 + $0x110] sm:$0xff] }
 0x2e0   :  { %v479_v55 = vadd.f32 %v478_v50, %v387_v29  ;;  %v862_v29 = vld [vmem:[#allocation14 + $0x250] sm:$0xff]  ;;  %v2337_v39 = vpack.c.bf16 %v816_v28, %v813_v23  ;;  %v2339_v47 = vpack.c.bf16 %v815_v37, %v812_v36  ;;  %v2341_v50 = vpack.c.bf16 %v822_v44, %v819_v40  ;;  %v857_v28 = vld [vmem:[#allocation14 + $0x228] sm:$0xff]  ;;  %v860_v37 = vld [vmem:[#allocation14 + $0x240] sm:$0xff] }
 0x2e1   :  { %v483_v60 = vmul.f32 0.01, %v477_v49  ;;  %2050 = vmatprep.mubr.msk.f32.mxu1 %vm611_vm2, %v486_v51  ;;  %2052 = vmatprep.mubr.msk.f32.mxu0 %vm611_vm2, %v486_v51  ;;  %v2461_v41 = vpack.c.bf16 %v865_v32, %v862_v29  ;;  %v818_v48 = vld [vmem:[#allocation14 + $0xf0] sm:$0xff]  ;;  %v821_v51 = vld [vmem:[#allocation14 + $0x108] sm:$0xff]  ;;  %v864_v32 = vld [vmem:[#allocation14 + $0x260] sm:$0xff] }
 0x2e2   :  { %v484_v0 = vmul.f32 0.01, %v479_v55  ;;  %683 = vmatmul.mubr.f32.vlgmr.msra.gmra.mrb[0].mxu1 %v485_v54  ;;  %760 = vmatmul.mubr.f32.vlgmr.msra.gmra.mrb[4].mxu0 %v485_v54  ;;  %v823_v54 = vld [vmem:[#allocation14 + $0x118] sm:$0xff]  ;;  %v2343_v57 = vpack.c.bf16 %v821_v51, %v818_v48  ;;  %v858_v23 = vld [vmem:[#allocation14 + $0x230] sm:$0xff]  ;;  %v861_v29 = vld [vmem:[#allocation14 + $0x248] sm:$0xff] }
 0x2e3   :  { %v487_v4 = vmax.f32 %v477_v49, %v483_v60  ;;  %2324 = vmatpush1.bf16.msra.mxu1 %v2323_v52  ;;  %2448 = vmatpush3.bf16.msra.mxu0 %v2447_v53  ;;  %v2463_v49 = vpack.c.bf16 %v817_v43, %v814_v42  ;;  %v2465_v52 = vpack.c.bf16 %v871_v46, %v868_v45  ;;  %v820_v53 = vld [vmem:[#allocation14 + $0x100] sm:$0xff]  ;;  %v870_v40 = vld [vmem:[#allocation14 + $0x290] sm:$0xff]  ;;  %v869_v44 = vld [vmem:[#allocation14 + $0x288] sm:$0xff] }
 0x2e4   :  { %v488_v5 = vmax.f32 %v479_v55, %v484_v0  ;;  %2326 = vmatprep.subr.bf16.mxu1 %v2325_v56  ;;  %2450 = vmatprep.subr.bf16.mxu0 %v2449_v59  ;;  %v825_v55 = vld [vmem:[#allocation14 + $0x128] sm:$0xff]  ;;  %v828_v56 = vld [vmem:[#allocation14 + $0x140] sm:$0xff]  ;;  %v2467_v58 = vpack.c.bf16 %v823_v54, %v820_v53  ;;  %v2369_v36 = vpack.c.bf16 %v864_v32, %v861_v29  ;;  %v866_v43 = vld [vmem:[#allocation14 + $0x270] sm:$0xff] }
 0x2e5   :  { %v2345_v59 = vpack.c.bf16 %v828_v56, %v825_v55  ;;  %v824_v60 = vld [vmem:[#allocation14 + $0x120] sm:$0xff]  ;;  %v2375_v45 = vpack.c.bf16 %v869_v44, %v866_v43  ;;  %v873_v46 = vld [vmem:[#allocation14 + $0x2a8] sm:$0xff]  ;;  %v874_v48 = vld [vmem:[#allocation14 + $0x2b0] sm:$0xff] }
 0x2e6   :  { %2051 = vmatprep.mubr.msk.f32.mxu1 %vm611_vm2, %v488_v5  ;;  %2053 = vmatprep.mubr.msk.f32.mxu0 %vm611_vm2, %v488_v5  ;;  %v2347_v0 = vpack.c.bf16 %v827_v61, %v824_v60  ;;  %v840_v5 = vld [vmem:[#allocation14 + $0x1a0] sm:$0xff]  ;;  %v826_v55 = vld [vmem:[#allocation14 + $0x130] sm:$0xff]  ;;  %v829_v56 = vld [vmem:[#allocation14 + $0x148] sm:$0xff] }
 0x2e7   :  { %689 = vmatmul.mubr.f32.gmra.mrb[2].mxu1 %v487_v4  ;;  %766 = vmatmul.mubr.f32.gmra.mrb[6].mxu0 %v487_v4  ;;  %v837_v4 = vld [vmem:[#allocation14 + $0x188] sm:$0xff]  ;;  %v872_v51 = vld [vmem:[#allocation14 + $0x2a0] sm:$0xff]  ;;  %v894_v29 = vld [vmem:[#allocation14 + $0x350] sm:$0xff] }
 0x2e8   :  { %2328 = vmatpush1.bf16.msra.mxu1 %v2327_v6  ;;  %2452 = vmatpush3.bf16.msra.mxu0 %v2451_v9  ;;  %v2351_v6 = vpack.c.bf16 %v833_v3, %v830_v2  ;;  %v2353_v7 = vpack.c.bf16 %v840_v5, %v837_v4  ;;  %v839_v9 = vld [vmem:[#allocation14 + $0x198] sm:$0xff]  ;;  %v880_v60 = vld [vmem:[#allocation14 + $0x2e0] sm:$0xff] }
 0x2e9   :  { %2330 = vmatprep.subr.bf16.mxu1 %v2329_v10  ;;  %2454 = vmatprep.subr.bf16.mxu0 %v2453_v12  ;;  %v843_v10 = vld [vmem:[#allocation14 + $0x1b8] sm:$0xff]  ;;  %v2355_v12 = vpack.c.bf16 %v839_v9, %v836_v8  ;;  %v832_v3 = vld [vmem:[#allocation14 + $0x160] sm:$0xff]  ;;  %v3239_v9 = vmov 0.0|0.0  }
 0x2ea   :  { %v2357_v13 = vpack.c.bf16 %v846_v11, %v843_v10  ;;  %v835_v4 = vld [vmem:[#allocation14 + $0x178] sm:$0xff] }
 0x2eb   :  { %v2475_v5 = vpack.c.bf16 %v835_v4, %v832_v3  ;;  %v3623_v10 = vld [vmem:[#allocation13] sm:$0xf]  ;;  %v902_v4 = vld [vmem:[#allocation14 + $0x390] sm:$0xff] }
 0x2ec   :  { %2332 = vmatpush1.bf16.msra.mxu1 %v2331_v18  ;;  %2456 = vmatpush3.bf16.msra.mxu0 %v2455_v21  ;;  %v2359_v18 = vpack.c.bf16 %v845_v15, %v842_v14  ;;  %v851_v21 = vld [vmem:[#allocation14 + $0x1f8] sm:$0xff]  ;;  %v594_v11 = vrot.slane %v3623_v10, %v3602_v31 }
 0x2ed   :  { %2334 = vmatprep.subr.bf16.mxu1 %v2333_v22  ;;  %2458 = vmatprep.subr.bf16.mxu0 %v2457_v25  ;;  %v855_v22 = vld [vmem:[#allocation14 + $0x218] sm:$0xff]  ;;  %v2363_v25 = vpack.c.bf16 %v851_v21, %v848_v20  ;;  %v884_v21 = vld [vmem:[#allocation14 + $0x300] sm:$0xff] }
 0x2ee   :  { %v2365_v26 = vpack.c.bf16 %v858_v23, %v855_v22  ;;  %v887_v22 = vld [vmem:[#allocation14 + $0x318] sm:$0xff] }
 0x2f0   :  { %2336 = vmatpush1.bf16.msra.mxu1 %v2335_v33  ;;  %2460 = vmatpush3.bf16.msra.mxu0 %v2459_v38  ;;  %v2367_v33 = vpack.c.bf16 %v857_v28, %v854_v27  ;;  %v863_v38 = vld [vmem:[#allocation14 + $0x258] sm:$0xff] }
 0x2f1   :  { %2338 = vmatprep.subr.bf16.mxu1 %v2337_v39  ;;  %2462 = vmatprep.subr.bf16.mxu0 %v2461_v41  ;;  %v867_v39 = vld [vmem:[#allocation14 + $0x278] sm:$0xff]  ;;  %v2371_v41 = vpack.c.bf16 %v863_v38, %v860_v37 }
 0x2f2   :  { %v2373_v42 = vpack.c.bf16 %v870_v40, %v867_v39  ;;  %v891_v28 = vld [vmem:[#allocation14 + $0x338] sm:$0xff] }
 0x2f4   :  { %2340 = vmatpush1.bf16.msra.mxu1 %v2339_v47  ;;  %2464 = vmatpush3.bf16.msra.mxu0 %v2463_v49  ;;  %v876_v47 = vld [vmem:[#allocation14 + $0x2c0] sm:$0xff] }
 0x2f5   :  { %2342 = vmatprep.subr.bf16.mxu1 %v2341_v50  ;;  %2466 = vmatprep.subr.bf16.mxu0 %v2465_v52  ;;  %v2377_v49 = vpack.c.bf16 %v876_v47, %v873_v46  ;;  %v877_v50 = vld [vmem:[#allocation14 + $0x2c8] sm:$0xff]  ;;  %v875_v52 = vld [vmem:[#allocation14 + $0x2b8] sm:$0xff]  ;;  %v892_v47 = vld [vmem:[#allocation14 + $0x340] sm:$0xff] }
 0x2f6   :  { %v2469_v53 = vpack.c.bf16 %v877_v50, %v874_v48  ;;  %v2379_v54 = vpack.c.bf16 %v875_v52, %v872_v51  ;;  %v893_v46 = vld [vmem:[#allocation14 + $0x348] sm:$0xff]  ;;  %v895_v48 = vld [vmem:[#allocation14 + $0x358] sm:$0xff] }
 0x2f8   :  { %2344 = vmatpush1.bf16.msra.mxu1 %v2343_v57  ;;  %2468 = vmatpush3.bf16.msra.mxu0 %v2467_v58  ;;  %v2471_v57 = vpack.c.bf16 %v829_v56, %v826_v55  ;;  %v879_v58 = vld [vmem:[#allocation14 + $0x2d8] sm:$0xff]  ;;  %v900_v55 = vld [vmem:[#allocation14 + $0x380] sm:$0xff] }
 0x2f9   :  { %2346 = vmatprep.subr.bf16.mxu1 %v2345_v59  ;;  %2470 = vmatprep.subr.bf16.mxu0 %v2469_v53  ;;  %v882_v59 = vld [vmem:[#allocation14 + $0x2f0] sm:$0xff]  ;;  %v2481_v53 = vpack.c.bf16 %v895_v48, %v892_v47  ;;  %v896_v56 = vld [vmem:[#allocation14 + $0x360] sm:$0xff] }
 0x2fa   :  { %v2381_v61 = vpack.c.bf16 %v882_v59, %v879_v58  ;;  %v899_v59 = vld [vmem:[#allocation14 + $0x378] sm:$0xff]  ;;  %v930_v47 = vld [vmem:[#allocation14 + $0x470] sm:$0xff] }
 0x2fc   :  { %2348 = vmatpush1.bf16.msra.mxu1 %v2347_v0  ;;  %2472 = vmatpush3.bf16.msra.mxu0 %v2471_v57  ;;  %v881_v0 = vld [vmem:[#allocation14 + $0x2e8] sm:$0xff] }
 0x2fd   :  { %2350 = vmatprep.subr.bf16.mxu1 %v2349_v1  ;;  %v2473_v1 = vpack.c.bf16 %v883_v62, %v880_v60  ;;  %v2383_v2 = vpack.c.bf16 %v881_v0, %v878_v63  ;;  %v898_v60 = vld [vmem:[#allocation14 + $0x370] sm:$0xff]  ;;  %v903_v62 = vld [vmem:[#allocation14 + $0x398] sm:$0xff] }
 0x2fe   :  { %v906_v63 = vld [vmem:[#allocation14 + $0x3b0] sm:$0xff] }
 0x2ff   :  { %2474 = vmatprep.subr.bf16.mxu0 %v2473_v1 }
 0x300   :  { %2352 = vmatpush1.bf16.msra.mxu1 %v2351_v6  ;;  %v885_v6 = vld [vmem:[#allocation14 + $0x308] sm:$0xff]  ;;  %2476 = vmatpush3.bf16.msra.mxu0 %v2475_v5  ;;  %v2397_v5 = vpack.c.bf16 %v906_v63, %v903_v62  ;;  %v934_v62 = vld [vmem:[#allocation14 + $0x490] sm:$0xff] }
 0x301   :  { %2354 = vmatprep.subr.bf16.mxu1 %v2353_v7  ;;  %v888_v7 = vld [vmem:[#allocation14 + $0x320] sm:$0xff]  ;;  %2477 = vmatprep.subr.bf16.mxu0 %v3239_v9  ;;  %v937_v63 = vld [vmem:[#allocation14 + $0x4a8] sm:$0xff] }
 0x302   :  { %v2385_v8 = vpack.c.bf16 %v888_v7, %v885_v6  ;;  %v905_v6 = vld [vmem:[#allocation14 + $0x3a8] sm:$0xff]  ;;  %v904_v7 = vld [vmem:[#allocation14 + $0x3a0] sm:$0xff] }
 0x304   :  { %2356 = vmatpush1.bf16.msra.mxu1 %v2355_v12  ;;  %v598_v12 = vrot.slane %v3623_v10, %v3609_v35 }
 0x305   :  { %2358 = vmatprep.subr.bf16.mxu1 %v2357_v13  ;;  %v605_v13 = vsub.s32 3, %v3599_v30  ;;  %v2387_v30 = vpack.c.bf16 %v887_v22, %v884_v21  ;;  %v913_v21 = vld [vmem:[#allocation14 + $0x3e8] sm:$0xff]  ;;  %v915_v22 = vld [vmem:[#allocation14 + $0x3f8] sm:$0xff] }
 0x307   :  { %v3633_v20 = vrot.slane %v3623_v10, %v605_v13  ;;  %v2399_v13 = vpack.c.bf16 %v905_v6, %v902_v4  ;;  %v938_v4 = vld [vmem:[#allocation14 + $0x4b0] sm:$0xff]  ;;  %v941_v6 = vld [vmem:[#allocation14 + $0x4c8] sm:$0xff] }
 0x308   :  { %2360 = vmatpush1.bf16.msra.mxu1 %v2359_v18 }
 0x309   :  { %2362 = vmatprep.subr.bf16.mxu1 %v2361_v19 }
 0x30c   :  { %2364 = vmatpush1.bf16.msra.mxu1 %v2363_v25  ;;  %v886_v25 = vld [vmem:[#allocation14 + $0x310] sm:$0xff] }
 0x30d   :  { %2366 = vmatprep.subr.bf16.mxu1 %v2365_v26  ;;  %v889_v26 = vld [vmem:[#allocation14 + $0x328] sm:$0xff] }
 0x30e   :  { %v2478_v40 = vpack.c.bf16 %v889_v26, %v886_v25 }
 0x310   :  { %2368 = vmatpush1.bf16.msra.mxu1 %v2367_v33 }
 0x311   :  { %2370 = vmatprep.subr.bf16.mxu1 %v2369_v36 }
 0x314   :  { %2372 = vmatpush1.bf16.msra.mxu1 %v2371_v41  ;;  %v890_v41 = vld [vmem:[#allocation14 + $0x330] sm:$0xff] }
 0x315   :  { %2374 = vmatprep.subr.bf16.mxu1 %v2373_v42  ;;  %v2391_v52 = vpack.c.bf16 %v893_v46, %v890_v41  ;;  %v927_v46 = vld [vmem:[#allocation14 + $0x458] sm:$0xff] }
 0x318   :  { %2376 = vmatpush1.bf16.msra.mxu1 %v2375_v45  ;;  %v2389_v45 = vpack.c.bf16 %v894_v29, %v891_v28  ;;  %v917_v29 = vld [vmem:[#allocation14 + $0x408] sm:$0xff] }
 0x319   :  { %2378 = vmatprep.subr.bf16.mxu1 %v2377_v49 }
 0x31c   :  { %2380 = vmatpush1.bf16.msra.mxu1 %v2379_v54  ;;  %v897_v54 = vld [vmem:[#allocation14 + $0x368] sm:$0xff] }
 0x31d   :  { %2382 = vmatprep.subr.bf16.mxu1 %v2381_v61  ;;  %v901_v61 = vld [vmem:[#allocation14 + $0x388] sm:$0xff]  ;;  %v2393_v0 = vpack.c.bf16 %v900_v55, %v897_v54  ;;  %v931_v54 = vld [vmem:[#allocation14 + $0x478] sm:$0xff] }
 0x31e   :  { %v2484_v3 = vpack.c.bf16 %v901_v61, %v898_v60  ;;  %v933_v55 = vld [vmem:[#allocation14 + $0x488] sm:$0xff]  ;;  %v935_v61 = vld [vmem:[#allocation14 + $0x498] sm:$0xff] }
 0x320   :  { %2384 = vmatpush1.bf16.msra.mxu1 %v2383_v2  ;;  %v2395_v2 = vpack.c.bf16 %v899_v59, %v896_v56  ;;  %v936_v56 = vld [vmem:[#allocation14 + $0x4a0] sm:$0xff] }
 0x321   :  { %2386 = vmatprep.subr.bf16.mxu1 %v2385_v8  ;;  %v907_v8 = vld [vmem:[#allocation14 + $0x3b8] sm:$0xff]  ;;  %v932_v59 = vld [vmem:[#allocation14 + $0x480] sm:$0xff]  ;;  %v2417_v60 = vpack.c.bf16 %v936_v56, %v933_v55  ;;  %v969_v55 = vld [vmem:[#allocation14 + $0x5a8] sm:$0xff] }
 0x322   :  { %v972_v56 = vld [vmem:[#allocation14 + $0x5c0] sm:$0xff] }
 0x3b5   :  { %v684_v14 = vpop.f32.mrb[0].mxu1  ;;  %v3630_v15 = vpop.f32.mrb[4].mxu0 }
 0x3b6   :  { %v685_v16 = vadd.f32 %v684_v14, %v594_v11  ;;  %v686_v17 = vpop.f32.mrb[1].mxu1  ;;  %v763_v18 = vpop.f32.mrb[5].mxu0  ;;  %v2487_v14 = vpack.c.bf16 %v907_v8, %v904_v7  ;;  %v940_v7 = vld [vmem:[#allocation14 + $0x4c0] sm:$0xff]  ;;  %v943_v8 = vld [vmem:[#allocation14 + $0x4d8] sm:$0xff] }
 0x3b7   :  { %v687_v19 = vadd.f32 %v686_v17, %v598_v12  ;;  %v764_v37 = vadd.f32 %v763_v18, %v3633_v20  ;;  %v911_v18 = vld [vmem:[#allocation14 + $0x3d8] sm:$0xff] }
 0x3b8   :  { %v772_v23 = vmul.f32 0.01, %v685_v16 }
 0x3b9   :  { %v773_v27 = vmul.f32 0.01, %v687_v19  ;;  %v775_v51 = vmul.f32 0.01, %v764_v37 }
 0x3ba   :  { %v690_v32 = vpop.f32.mrb[2].mxu1  ;;  %v3635_v33 = vpop.f32.mrb[6].mxu0  ;;  %v780_v43 = vmax.f32 %v685_v16, %v772_v23  ;;  %v908_v16 = vld [vmem:[#allocation14 + $0x3c0] sm:$0xff]  ;;  %v918_v23 = vld [vmem:[#allocation14 + $0x410] sm:$0xff] }
 0x3bb   :  { %v781_v36 = vmax.f32 %v687_v19, %v773_v27  ;;  %v691_v38 = vadd.f32 %v690_v32, %v594_v11  ;;  %v692_v39 = vpop.f32.mrb[3].mxu1  ;;  %v3638_v42 = vpop.f32.mrb[7].mxu0  ;;  %v783_v1 = vmax.f32 %v764_v37, %v775_v51  ;;  %v909_v11 = vld [vmem:[#allocation14 + $0x3c8] sm:$0xff]  ;;  %v910_v19 = vld [vmem:[#allocation14 + $0x3d0] sm:$0xff]  ;;  %v2403_v25 = vpack.c.bf16 %v911_v18, %v908_v16  ;;  %v916_v32 = vld [vmem:[#allocation14 + $0x400] sm:$0xff] }
 0x3bc   :  { %v693_v44 = vadd.f32 %v692_v39, %v598_v12  ;;  %v912_v12 = vld [vmem:[#allocation14 + $0x3e0] sm:$0xff]  ;;  %v2490_v26 = vpack.c.bf16 %v913_v21, %v910_v19  ;;  %v914_v27 = vld [vmem:[#allocation14 + $0x3f0] sm:$0xff]  ;;  %v2405_v28 = vpack.c.bf16 %v918_v23, %v915_v22  ;;  %v2413_v51 = vpack.c.bf16 %v930_v47, %v927_v46  ;;  %v947_v18 = vld [vmem:[#allocation14 + $0x4f8] sm:$0xff] }
 0x3bd   :  { %v776_v49 = vmul.f32 0.01, %v691_v38  ;;  %1075 = vmatprep.mubr.f32.mxu1 %v781_v36  ;;  %1229 = vmatprep.mubr.f32.mxu0 %v781_v36  ;;  %v2401_v17 = vpack.c.bf16 %v912_v12, %v909_v11  ;;  %v921_v36 = vld [vmem:[#allocation14 + $0x428] sm:$0xff]  ;;  %v924_v37 = vld [vmem:[#allocation14 + $0x440] sm:$0xff]  ;;  %v946_v19 = vld [vmem:[#allocation14 + $0x4f0] sm:$0xff] }
 0x3be   :  { %v777_v50 = vmul.f32 0.01, %v693_v44  ;;  %1076 = vmatmul.mubr.f32.vlgmr.msra.gmra.mrb[4].mxu1 %v780_v43  ;;  %1230 = vmatmul.mubr.f32.vlgmr.msra.gmra.mrb[8].mxu0 %v780_v43  ;;  %v2409_v41 = vpack.c.bf16 %v924_v37, %v921_v36  ;;  %v923_v43 = vld [vmem:[#allocation14 + $0x438] sm:$0xff]  ;;  %v945_v11 = vld [vmem:[#allocation14 + $0x4e8] sm:$0xff]  ;;  %v948_v12 = vld [vmem:[#allocation14 + $0x500] sm:$0xff] }
 0x3bf   :  { %2388 = vmatpush1.bf16.msra.mxu1 %v2387_v30  ;;  %2479 = vmatpush1.bf16.msra.mxu0 %v2478_v40  ;;  %v784_v57 = vmax.f32 %v691_v38, %v776_v49  ;;  %v919_v30 = vld [vmem:[#allocation14 + $0x418] sm:$0xff]  ;;  %v2407_v38 = vpack.c.bf16 %v917_v29, %v914_v27  ;;  %v920_v40 = vld [vmem:[#allocation14 + $0x420] sm:$0xff]  ;;  %v949_v21 = vld [vmem:[#allocation14 + $0x508] sm:$0xff] }
 0x3c0   :  { %v785_v58 = vmax.f32 %v693_v44, %v777_v50  ;;  %2390 = vmatprep.subr.bf16.mxu1 %v2389_v45  ;;  %2480 = vmatprep.subr.bf16.mxu0 %v3239_v9  ;;  %v2493_v39 = vpack.c.bf16 %v919_v30, %v916_v32  ;;  %v922_v44 = vld [vmem:[#allocation14 + $0x430] sm:$0xff]  ;;  %v925_v45 = vld [vmem:[#allocation14 + $0x448] sm:$0xff]  ;;  %v2411_v48 = vpack.c.bf16 %v923_v43, %v920_v40  ;;  %v944_v16 = vld [vmem:[#allocation14 + $0x4e0] sm:$0xff] }
 0x3c1   :  { %v2496_v49 = vpack.c.bf16 %v925_v45, %v922_v44  ;;  %v926_v50 = vld [vmem:[#allocation14 + $0x450] sm:$0xff]  ;;  %v951_v22 = vld [vmem:[#allocation14 + $0x518] sm:$0xff]  ;;  %v953_v29 = vld [vmem:[#allocation14 + $0x528] sm:$0xff] }
 0x3c2   :  { %1081 = vmatprep.mubr.f32.mxu1 %v785_v58  ;;  %1234 = vmatprep.mubr.f32.mxu0 %v785_v58  ;;  %v954_v23 = vld [vmem:[#allocation14 + $0x530] sm:$0xff]  ;;  %v952_v32 = vld [vmem:[#allocation14 + $0x520] sm:$0xff]  ;;  %v955_v30 = vld [vmem:[#allocation14 + $0x538] sm:$0xff] }
 0x3c3   :  { %2392 = vmatpush1.bf16.msra.mxu1 %v2391_v52  ;;  %2482 = vmatpush1.bf16.msra.mxu0 %v2481_v53  ;;  %v929_v52 = vld [vmem:[#allocation14 + $0x468] sm:$0xff]  ;;  %v928_v53 = vld [vmem:[#allocation14 + $0x460] sm:$0xff]  ;;  %v950_v27 = vld [vmem:[#allocation14 + $0x510] sm:$0xff] }
 0x3c4   :  { %1082 = vmatmul.mubr.f32.gmra.mrb[6].mxu1 %v784_v57  ;;  %1235 = vmatmul.mubr.f32.gmra.mrb[10].mxu0 %v784_v57  ;;  %v2415_v57 = vpack.c.bf16 %v929_v52, %v926_v50  ;;  %v2499_v58 = vpack.c.bf16 %v931_v54, %v928_v53  ;;  %v957_v36 = vld [vmem:[#allocation14 + $0x548] sm:$0xff]  ;;  %v960_v37 = vld [vmem:[#allocation14 + $0x560] sm:$0xff]  ;;  %v959_v43 = vld [vmem:[#allocation14 + $0x558] sm:$0xff] }
 0x3c5   :  { %2056 = vmatprep.mubr.msk.f32.mxu1 %vm994_vm3, %v783_v1  ;;  %2059 = vmatprep.mubr.msk.f32.mxu0 %vm994_vm3, %v783_v1  ;;  %v942_v1 = vld [vmem:[#allocation14 + $0x4d0] sm:$0xff]  ;;  %v956_v40 = vld [vmem:[#allocation14 + $0x540] sm:$0xff]  ;;  %v961_v45 = vld [vmem:[#allocation14 + $0x568] sm:$0xff] }
 0x3c6   :  { %2394 = vmatprep.subr.bf16.mxu1 %v2393_v0  ;;  %2483 = vmatprep.subr.bf16.mxu0 %v3239_v9  ;;  %v939_v0 = vld [vmem:[#allocation14 + $0x4b8] sm:$0xff]  ;;  %v958_v44 = vld [vmem:[#allocation14 + $0x550] sm:$0xff]  ;;  %v965_v52 = vld [vmem:[#allocation14 + $0x588] sm:$0xff] }
 0x3c7   :  { %2396 = vmatpush1.bf16.msra.mxu1 %v2395_v2  ;;  %2485 = vmatpush1.bf16.msra.mxu0 %v2484_v3  ;;  %v2419_v2 = vpack.c.bf16 %v935_v61, %v932_v59  ;;  %v2502_v3 = vpack.c.bf16 %v937_v63, %v934_v62  ;;  %v963_v46 = vld [vmem:[#allocation14 + $0x578] sm:$0xff]  ;;  %v966_v47 = vld [vmem:[#allocation14 + $0x590] sm:$0xff]  ;;  %v964_v53 = vld [vmem:[#allocation14 + $0x580] sm:$0xff]  ;;  %v2441_v61 = vpack.c.bf16 %v972_v56, %v969_v55 }
 0x3c8   :  { %2398 = vmatprep.subr.bf16.mxu1 %v2397_v5  ;;  %2486 = vmatprep.subr.bf16.mxu0 %v3239_v9  ;;  %v2421_v5 = vpack.c.bf16 %v942_v1, %v939_v0  ;;  %v962_v50 = vld [vmem:[#allocation14 + $0x570] sm:$0xff]  ;;  %v967_v54 = vld [vmem:[#allocation14 + $0x598] sm:$0xff]  ;;  %v973_v0 = vld [vmem:[#allocation14 + $0x5c8] sm:$0xff] }
 0x3c9   :  { %v2517_v59 = vpack.c.bf16 %v967_v54, %v964_v53  ;;  %v971_v62 = vld [vmem:[#allocation14 + $0x5b8] sm:$0xff]  ;;  %v970_v63 = vld [vmem:[#allocation14 + $0x5b0] sm:$0xff]  ;;  %v1354_v56 = vld [vmem:[#allocation17 + $0xd8] sm:$0xff] }
 0x3ca   :  { %v1347_v53 = vld [vmem:[#allocation17 + $0xa0] sm:$0xff]  ;;  %v1349_v54 = vld [vmem:[#allocation17 + $0xb0] sm:$0xff]  ;;  %v1352_v55 = vld [vmem:[#allocation17 + $0xc8] sm:$0xff] }
 0x3cb   :  { %2400 = vmatpush1.bf16.msra.mxu1 %v2399_v13  ;;  %2488 = vmatpush1.bf16.msra.mxu0 %v2487_v14  ;;  %v2423_v13 = vpack.c.bf16 %v941_v6, %v938_v4  ;;  %v2505_v14 = vpack.c.bf16 %v943_v8, %v940_v7  ;;  %v975_v4 = vld [vmem:[#allocation14 + $0x5d8] sm:$0xf] }
 0x3cc   :  { %2402 = vmatprep.subr.bf16.mxu1 %v2401_v17  ;;  %2489 = vmatprep.subr.bf16.mxu0 %v3239_v9  ;;  %v2425_v17 = vpack.c.bf16 %v948_v12, %v945_v11  ;;  %v1328_v12 = vld [vmem:[#allocation17 + $0x8] sm:$0xff] }
 0x3cf   :  { %2404 = vmatpush1.bf16.msra.mxu1 %v2403_v25  ;;  %2491 = vmatpush1.bf16.msra.mxu0 %v2490_v26  ;;  %v2427_v25 = vpack.c.bf16 %v947_v18, %v944_v16  ;;  %v2508_v26 = vpack.c.bf16 %v949_v21, %v946_v19  ;;  %v1332_v18 = vld [vmem:[#allocation17 + $0x28] sm:$0xff]  ;;  %v1334_v19 = vld [vmem:[#allocation17 + $0x38] sm:$0xff] }
 0x3d0   :  { %2406 = vmatprep.subr.bf16.mxu1 %v2405_v28  ;;  %2492 = vmatprep.subr.bf16.mxu0 %v3239_v9  ;;  %v2429_v28 = vpack.c.bf16 %v954_v23, %v951_v22  ;;  %v2526_v22 = vpack.c.bf16 %v1334_v19, %v1332_v18  ;;  %v1331_v23 = vld [vmem:[#allocation17 + $0x20] sm:$0xff]  ;;  %v1369_v18 = vld [vmem:[#allocation17 + $0x150] sm:$0xff]  ;;  %v1372_v19 = vld [vmem:[#allocation17 + $0x168] sm:$0xff] }
 0x3d3   :  { %2408 = vmatpush1.bf16.msra.mxu1 %v2407_v38  ;;  %2494 = vmatpush1.bf16.msra.mxu0 %v2493_v39  ;;  %v2431_v38 = vpack.c.bf16 %v953_v29, %v950_v27  ;;  %v2511_v39 = vpack.c.bf16 %v955_v30, %v952_v32  ;;  %v1338_v27 = vld [vmem:[#allocation17 + $0x58] sm:$0xff]  ;;  %v1335_v32 = vld [vmem:[#allocation17 + $0x40] sm:$0xff]  ;;  %v1337_v30 = vld [vmem:[#allocation17 + $0x50] sm:$0xff] }
 0x3d4   :  { %2410 = vmatprep.subr.bf16.mxu1 %v2409_v41  ;;  %2495 = vmatprep.subr.bf16.mxu0 %v3239_v9  ;;  %v2433_v41 = vpack.c.bf16 %v960_v37, %v957_v36  ;;  %v1340_v36 = vld [vmem:[#allocation17 + $0x68] sm:$0xff]  ;;  %v1342_v37 = vld [vmem:[#allocation17 + $0x78] sm:$0xff] }
 0x3d7   :  { %2412 = vmatpush1.bf16.msra.mxu1 %v2411_v48  ;;  %2497 = vmatpush1.bf16.msra.mxu0 %v2496_v49  ;;  %v2435_v48 = vpack.c.bf16 %v959_v43, %v956_v40  ;;  %v2514_v49 = vpack.c.bf16 %v961_v45, %v958_v44  ;;  %v1339_v40 = vld [vmem:[#allocation17 + $0x60] sm:$0xff]  ;;  %v1344_v43 = vld [vmem:[#allocation17 + $0x88] sm:$0xff]  ;;  %v1346_v44 = vld [vmem:[#allocation17 + $0x98] sm:$0xff] }
 0x3d8   :  { %2414 = vmatprep.subr.bf16.mxu1 %v2413_v51  ;;  %2498 = vmatprep.subr.bf16.mxu0 %v3239_v9  ;;  %v2437_v51 = vpack.c.bf16 %v966_v47, %v963_v46  ;;  %v2538_v46 = vpack.c.bf16 %v1346_v44, %v1344_v43  ;;  %v1343_v47 = vld [vmem:[#allocation17 + $0x80] sm:$0xff]  ;;  %v1381_v43 = vld [vmem:[#allocation17 + $0x1b0] sm:$0xff] }
 0x3db   :  { %2416 = vmatpush1.bf16.msra.mxu1 %v2415_v57  ;;  %2500 = vmatpush1.bf16.msra.mxu0 %v2499_v58  ;;  %v602_v57 = vrot.slane %v3623_v10, %v3606_v34  ;;  %v2439_v58 = vpack.c.bf16 %v965_v52, %v962_v50  ;;  %v1350_v50 = vld [vmem:[#allocation17 + $0xb8] sm:$0xff] }
 0x3dc   :  { %2418 = vmatprep.subr.bf16.mxu1 %v2417_v60  ;;  %2501 = vmatprep.subr.bf16.mxu0 %v3239_v9  ;;  %v968_v60 = vld [vmem:[#allocation14 + $0x5a0] sm:$0xff] }
 0x3dd   :  { %v762_v1 = vadd.f32 %v3630_v15, %v602_v57  ;;  %v2443_v10 = vpack.c.bf16 %v971_v62, %v968_v60  ;;  %v768_v6 = vadd.f32 %v3635_v33, %v602_v57  ;;  %v974_v15 = vld [vmem:[#allocation14 + $0x5d0] sm:$0xf]  ;;  %v2544_v57 = vpack.c.bf16 %v1349_v54, %v1347_v53  ;;  %v1353_v60 = vld [vmem:[#allocation17 + $0xd0] sm:$0xff]  ;;  %v1358_v62 = vld [vmem:[#allocation17 + $0xf8] sm:$0xff] }
 0x3de   :  { %v1387_v54 = vld [vmem:[#allocation17 + $0x1e0] sm:$0xff] }
 0x3df   :  { %2420 = vmatpush1.bf16.msra.mxu1 %v2419_v2  ;;  %2503 = vmatpush1.bf16.msra.mxu0 %v2502_v3  ;;  %v770_v2 = vadd.f32 %v3638_v42, %v3633_v20  ;;  %v2520_v3 = vpack.c.bf16 %v973_v0, %v970_v63  ;;  %v976_v20 = vld [vmem:[#allocation14 + $0x5e0] sm:$0xf]  ;;  %v778_v8 = vmul.f32 0.01, %v768_v6 }
 0x3e0   :  { %2422 = vmatprep.subr.bf16.mxu1 %v2421_v5  ;;  %2504 = vmatprep.subr.bf16.mxu0 %v3239_v9  ;;  %v774_v5 = vmul.f32 0.01, %v762_v1 }
 0x3e1   :  { %v779_v7 = vmul.f32 0.01, %v770_v2  ;;  %v786_v33 = vmax.f32 %v768_v6, %v778_v8  ;;  %v1359_v6 = vld [vmem:[#allocation17 + $0x100] sm:$0xff] }
 0x3e2   :  { %v782_v42 = vmax.f32 %v762_v1, %v774_v5  ;;  %v1355_v1 = vld [vmem:[#allocation17 + $0xe0] sm:$0xff] }
 0x3e3   :  { %2424 = vmatpush1.bf16.msra.mxu1 %v2423_v13  ;;  %2506 = vmatpush1.bf16.msra.mxu0 %v2505_v14  ;;  %v787_v11 = vmax.f32 %v770_v2, %v779_v7  ;;  %v1330_v13 = vld [vmem:[#allocation17 + $0x18] sm:$0xff]  ;;  %v1327_v14 = vld [vmem:[#allocation17] sm:$0xff]  ;;  %v1357_v2 = vld [vmem:[#allocation17 + $0xf0] sm:$0xff] }
 0x3e4   :  { %2426 = vmatprep.subr.bf16.mxu1 %v2425_v17  ;;  %2507 = vmatprep.subr.bf16.mxu0 %v3239_v9  ;;  %v2522_v16 = vpack.c.bf16 %v1330_v13, %v1328_v12  ;;  %v1329_v17 = vld [vmem:[#allocation17 + $0x10] sm:$0xff]  ;;  %v1368_v12 = vld [vmem:[#allocation17 + $0x148] sm:$0xff]  ;;  %v1370_v13 = vld [vmem:[#allocation17 + $0x158] sm:$0xff] }
 0x3e5   :  { %v2524_v21 = vpack.c.bf16 %v1329_v17, %v1327_v14  ;;  %v1361_v7 = vld [vmem:[#allocation17 + $0x110] sm:$0xff]  ;;  %v1367_v17 = vld [vmem:[#allocation17 + $0x140] sm:$0xff] }
 0x3e7   :  { %2428 = vmatpush1.bf16.msra.mxu1 %v2427_v25  ;;  %2509 = vmatpush1.bf16.msra.mxu0 %v2508_v26  ;;  %v1333_v25 = vld [vmem:[#allocation17 + $0x30] sm:$0xff]  ;;  %v1336_v26 = vld [vmem:[#allocation17 + $0x48] sm:$0xff] }
 0x3e8   :  { %2430 = vmatprep.subr.bf16.mxu1 %v2429_v28  ;;  %2510 = vmatprep.subr.bf16.mxu0 %v3239_v9  ;;  %v2528_v28 = vpack.c.bf16 %v1333_v25, %v1331_v23  ;;  %v2530_v29 = vpack.c.bf16 %v1338_v27, %v1336_v26  ;;  %v1371_v25 = vld [vmem:[#allocation17 + $0x160] sm:$0xff]  ;;  %v1373_v26 = vld [vmem:[#allocation17 + $0x170] sm:$0xff]  ;;  %v1376_v27 = vld [vmem:[#allocation17 + $0x188] sm:$0xff] }
 0x3eb   :  { %2432 = vmatpush1.bf16.msra.mxu1 %v2431_v38  ;;  %2512 = vmatpush1.bf16.msra.mxu0 %v2511_v39  ;;  %v2532_v38 = vpack.c.bf16 %v1337_v30, %v1335_v32  ;;  %v2534_v39 = vpack.c.bf16 %v1342_v37, %v1340_v36  ;;  %v1375_v30 = vld [vmem:[#allocation17 + $0x180] sm:$0xff]  ;;  %v1377_v36 = vld [vmem:[#allocation17 + $0x190] sm:$0xff]  ;;  %v1380_v37 = vld [vmem:[#allocation17 + $0x1a8] sm:$0xff] }
 0x3ec   :  { %2434 = vmatprep.subr.bf16.mxu1 %v2433_v41  ;;  %2513 = vmatprep.subr.bf16.mxu0 %v3239_v9  ;;  %v1341_v41 = vld [vmem:[#allocation17 + $0x70] sm:$0xff] }
 0x3ed   :  { %v2536_v45 = vpack.c.bf16 %v1341_v41, %v1339_v40  ;;  %v1379_v41 = vld [vmem:[#allocation17 + $0x1a0] sm:$0xff] }
 0x3ee   :  { %v2576_v44 = vpack.c.bf16 %v1381_v43, %v1379_v41 }
 0x3ef   :  { %2436 = vmatpush1.bf16.msra.mxu1 %v2435_v48  ;;  %2515 = vmatpush1.bf16.msra.mxu0 %v2514_v49  ;;  %v1345_v48 = vld [vmem:[#allocation17 + $0x90] sm:$0xff]  ;;  %v1348_v49 = vld [vmem:[#allocation17 + $0xa8] sm:$0xff] }
 0x3f0   :  { %2438 = vmatprep.subr.bf16.mxu1 %v2437_v51  ;;  %2516 = vmatprep.subr.bf16.mxu0 %v3239_v9  ;;  %v2540_v51 = vpack.c.bf16 %v1345_v48, %v1343_v47  ;;  %v2542_v52 = vpack.c.bf16 %v1350_v50, %v1348_v49  ;;  %v1383_v48 = vld [vmem:[#allocation17 + $0x1c0] sm:$0xff]  ;;  %v1385_v49 = vld [vmem:[#allocation17 + $0x1d0] sm:$0xff] }
 0x3f1   :  { %v2580_v50 = vpack.c.bf16 %v1385_v49, %v1383_v48 }
 0x3f3   :  { %2440 = vmatpush1.bf16.msra.mxu1 %v2439_v58  ;;  %2518 = vmatpush1.bf16.msra.mxu0 %v2517_v59  ;;  %v2546_v58 = vpack.c.bf16 %v1354_v56, %v1352_v55  ;;  %v1351_v59 = vld [vmem:[#allocation17 + $0xc0] sm:$0xff]  ;;  %v1389_v55 = vld [vmem:[#allocation17 + $0x1f0] sm:$0xff] }
 0x3f4   :  { %2442 = vmatprep.subr.bf16.mxu1 %v2441_v61  ;;  %2519 = vmatprep.subr.bf16.mxu0 %v3239_v9  ;;  %v1356_v61 = vld [vmem:[#allocation17 + $0xe8] sm:$0xff]  ;;  %v2548_v63 = vpack.c.bf16 %v1353_v60, %v1351_v59  ;;  %v2584_v56 = vpack.c.bf16 %v1389_v55, %v1387_v54 }
 0x3f5   :  { %v2550_v0 = vpack.c.bf16 %v1358_v62, %v1356_v61  ;;  %v1590_v60 = vld [vmem:[#allocation20] sm:$0xff]  ;;  %v1591_v61 = vld [vmem:[#allocation20 + $0x8] sm:$0xff]  ;;  %v1592_v62 = vld [vmem:[#allocation20 + $0x10] sm:$0xff] }
 0x3f7   :  { %2444 = vmatpush1.bf16.msra.mxu1 %v2443_v10  ;;  %2521 = vmatpush1.bf16.msra.mxu0 %v2520_v3  ;;  %v1360_v10 = vld [vmem:[#allocation17 + $0x108] sm:$0xff]  ;;  %v1362_v3 = vld [vmem:[#allocation17 + $0x118] sm:$0xff] }
 0x3f8   :  { %2054 = vmatprep.subr.msk.mxu1 %vm1001_vm4, %v975_v4  ;;  %1300 = vmatprep.subr.mxu0 %v3238_v24  ;;  %v2552_v4 = vpack.c.bf16 %v1357_v2, %v1355_v1  ;;  %v2554_v5 = vpack.c.bf16 %v1362_v3, %v1360_v10  ;;  %v1594_v2 = vld [vmem:[#allocation20 + $0x20] sm:$0xff]  ;;  %v1595_v10 = vld [vmem:[#allocation20 + $0x28] sm:$0xff] }
 0x3f9   :  { %v2607_v3 = vpack.c.bf16 %v1595_v10, %v1594_v2  ;;  %v1395_v10 = vld [vmem:[#allocation17 + $0x220] sm:$0xff] }
 0x3fb   :  { %2055 = vmatpush1.msk.msra.mxu1 %vm1001_vm4, %v974_v15  ;;  %2058 = vmatpush1.msk.msra.mxu0 %vm1001_vm4, %v976_v20  ;;  %v1364_v15 = vld [vmem:[#allocation17 + $0x128] sm:$0xff]  ;;  %v1366_v20 = vld [vmem:[#allocation17 + $0x138] sm:$0xff] }
 0x3fc   :  { %1153 = vmatmul.mubr.f32.vlgmr.msra.gmra.mrb[4].mxu1 %v782_v42  ;;  %1305 = vmatmul.mubr.f32.vlgmr.msra.gmra.mrb[12].mxu0 %v782_v42  ;;  %v2556_v42 = vpack.c.bf16 %v1361_v7, %v1359_v6  ;;  %v2558_v8 = vpack.c.bf16 %v1366_v20, %v1364_v15  ;;  %v1598_v7 = vld [vmem:[#allocation20 + $0x40] sm:$0xff]  ;;  %v1599_v15 = vld [vmem:[#allocation20 + $0x48] sm:$0xff] }
 0x3fd   :  { %2057 = vmatprep.mubr.msk.f32.mxu1 %vm994_vm3, %v787_v11  ;;  %2060 = vmatprep.mubr.msk.f32.mxu0 %vm994_vm3, %v787_v11  ;;  %v1363_v11 = vld [vmem:[#allocation17 + $0x120] sm:$0xff]  ;;  %v2613_v20 = vpack.c.bf16 %v1599_v15, %v1598_v7 }
 0x3fe   :  { %2600 = vmatprep.subr.bf16.mxu1 %v3239_v9  ;;  %2523 = vmatprep.subr.bf16.mxu0 %v2522_v16  ;;  %v2562_v16 = vpack.c.bf16 %v1370_v13, %v1368_v12  ;;  %v1603_v12 = vld [vmem:[#allocation20 + $0x68] sm:$0xff] }
 0x3ff   :  { %2525 = vmatpush1.bf16.msra.mxu0 %v2524_v21  ;;  %v1374_v21 = vld [vmem:[#allocation17 + $0x178] sm:$0xff] }
 0x400   :  { %1159 = vmatmul.mubr.f32.gmra.mrb[6].mxu1 %v786_v33  ;;  %1310 = vmatmul.mubr.f32.gmra.mrb[14].mxu0 %v786_v33  ;;  %v1365_v33 = vld [vmem:[#allocation17 + $0x130] sm:$0xff]  ;;  %v2566_v23 = vpack.c.bf16 %v1374_v21, %v1372_v19 }
 0x401   :  { %2527 = vmatprep.subr.bf16.mxu0 %v2526_v22  ;;  %v2560_v14 = vpack.c.bf16 %v1365_v33, %v1363_v11  ;;  %v2564_v22 = vpack.c.bf16 %v1369_v18, %v1367_v17  ;;  %v1602_v33 = vld [vmem:[#allocation20 + $0x60] sm:$0xff]  ;;  %v1607_v19 = vld [vmem:[#allocation20 + $0x88] sm:$0xff] }
 0x402   :  { %v2619_v13 = vpack.c.bf16 %v1603_v12, %v1602_v33  ;;  %v1606_v18 = vld [vmem:[#allocation20 + $0x80] sm:$0xff] }
 0x403   :  { %2529 = vmatpush1.bf16.msra.mxu0 %v2528_v28  ;;  %v1378_v28 = vld [vmem:[#allocation17 + $0x198] sm:$0xff]  ;;  %v2625_v21 = vpack.c.bf16 %v1607_v19, %v1606_v18  ;;  %v1611_v18 = vld [vmem:[#allocation20 + $0xa8] sm:$0xff] }
 0x404   :  { %2531 = vmatprep.subr.bf16.mxu0 %v2530_v29  ;;  %v2568_v29 = vpack.c.bf16 %v1373_v26, %v1371_v25  ;;  %v2570_v32 = vpack.c.bf16 %v1378_v28, %v1376_v27 }
 0x407   :  { %2533 = vmatpush1.bf16.msra.mxu0 %v2532_v38  ;;  %v1382_v38 = vld [vmem:[#allocation17 + $0x1b8] sm:$0xff] }
 0x408   :  { %2535 = vmatprep.subr.bf16.mxu0 %v2534_v39  ;;  %v2572_v39 = vpack.c.bf16 %v1377_v36, %v1375_v30  ;;  %v2574_v40 = vpack.c.bf16 %v1382_v38, %v1380_v37  ;;  %v977_v36 = vld [vmem:[#allocation16] sm:$0x7] }
 0x409   :  { %v990_v37 = vrot.slane %v977_v36, %v3606_v34  ;;  %v982_v38 = vrot.slane %v977_v36, %v3602_v31  ;;  %v1396_v34 = vld [vmem:[#allocation17 + $0x228] sm:$0xff] }
 0x40b   :  { %2537 = vmatpush1.bf16.msra.mxu0 %v2536_v45  ;;  %v1384_v45 = vld [vmem:[#allocation17 + $0x1c8] sm:$0xff] }
 0x40c   :  { %2539 = vmatprep.subr.bf16.mxu0 %v2538_v46  ;;  %v1386_v46 = vld [vmem:[#allocation17 + $0x1d8] sm:$0xff] }
 0x40d   :  { %v2578_v47 = vpack.c.bf16 %v1386_v46, %v1384_v45 }
 0x40f   :  { %2541 = vmatpush1.bf16.msra.mxu0 %v2540_v51  ;;  %v1388_v51 = vld [vmem:[#allocation17 + $0x1e8] sm:$0xff] }
 0x410   :  { %2543 = vmatprep.subr.bf16.mxu0 %v2542_v52  ;;  %v1390_v52 = vld [vmem:[#allocation17 + $0x1f8] sm:$0xff] }
 0x411   :  { %v2582_v53 = vpack.c.bf16 %v1390_v52, %v1388_v51  ;;  %v1391_v51 = vld [vmem:[#allocation17 + $0x200] sm:$0xff]  ;;  %v1393_v52 = vld [vmem:[#allocation17 + $0x210] sm:$0xff] }
 0x413   :  { %2545 = vmatpush1.bf16.msra.mxu0 %v2544_v57  ;;  %v1392_v57 = vld [vmem:[#allocation17 + $0x208] sm:$0xff] }
 0x414   :  { %2547 = vmatprep.subr.bf16.mxu0 %v2546_v58  ;;  %v1394_v58 = vld [vmem:[#allocation17 + $0x218] sm:$0xff] }
 0x415   :  { %v2586_v59 = vpack.c.bf16 %v1394_v58, %v1392_v57 }
 0x417   :  { %2549 = vmatpush1.bf16.msra.mxu0 %v2548_v63  ;;  %v2601_v63 = vpack.c.bf16 %v1591_v61, %v1590_v60 }
 0x418   :  { %2551 = vmatprep.subr.bf16.mxu0 %v2550_v0  ;;  %v1593_v0 = vld [vmem:[#allocation20 + $0x18] sm:$0xff] }
 0x419   :  { %2602 = vmatpush1.bf16.msra.mxu1 %v2601_v63  ;;  %v2604_v1 = vpack.c.bf16 %v1593_v0, %v1592_v62  ;;  %v2588_v63 = vpack.c.bf16 %v1393_v52, %v1391_v51 }
 0x41a   :  { %2603 = vmatprep.subr.bf16.mxu1 %v3239_v9 }
 0x41b   :  { %2553 = vmatpush1.bf16.msra.mxu0 %v2552_v4  ;;  %v1596_v4 = vld [vmem:[#allocation20 + $0x30] sm:$0xff] }
 0x41c   :  { %2555 = vmatprep.subr.bf16.mxu0 %v2554_v5  ;;  %v1597_v5 = vld [vmem:[#allocation20 + $0x38] sm:$0xff] }
 0x41d   :  { %2605 = vmatpush1.bf16.msra.mxu1 %v2604_v1  ;;  %v2610_v6 = vpack.c.bf16 %v1597_v5, %v1596_v4  ;;  %v1400_v5 = vld [vmem:[#allocation17 + $0x248] sm:$0xff] }
 0x41e   :  { %2606 = vmatprep.subr.bf16.mxu1 %v3239_v9 }
 0x41f   :  { %2557 = vmatpush1.bf16.msra.mxu0 %v2556_v42  ;;  %v1600_v42 = vld [vmem:[#allocation20 + $0x50] sm:$0xff] }
 0x420   :  { %2559 = vmatprep.subr.bf16.mxu0 %v2558_v8  ;;  %v1601_v8 = vld [vmem:[#allocation20 + $0x58] sm:$0xff] }
 0x421   :  { %2608 = vmatpush1.bf16.msra.mxu1 %v2607_v3  ;;  %v2616_v11 = vpack.c.bf16 %v1601_v8, %v1600_v42  ;;  %v1397_v3 = vld [vmem:[#allocation17 + $0x230] sm:$0xff]  ;;  %v1399_v8 = vld [vmem:[#allocation17 + $0x240] sm:$0xff] }
 0x422   :  { %2609 = vmatprep.subr.bf16.mxu1 %v3239_v9  ;;  %v2592_v15 = vpack.c.bf16 %v1397_v3, %v1395_v10  ;;  %v1819_v3 = vld [vmem:[#allocation26 + $0x18] sm:$0xff] }
 0x423   :  { %2561 = vmatpush1.bf16.msra.mxu0 %v2560_v14  ;;  %v1604_v14 = vld [vmem:[#allocation20 + $0x70] sm:$0xff] }
 0x424   :  { %2563 = vmatprep.subr.bf16.mxu0 %v2562_v16  ;;  %v1605_v16 = vld [vmem:[#allocation20 + $0x78] sm:$0xff] }
 0x425   :  { %2611 = vmatpush1.bf16.msra.mxu1 %v2610_v6  ;;  %v2622_v17 = vpack.c.bf16 %v1605_v16, %v1604_v14  ;;  %v1402_v6 = vld [vmem:[#allocation17 + $0x258] sm:$0xf] }
 0x426   :  { %2612 = vmatprep.subr.bf16.mxu1 %v3239_v9  ;;  %v2594_v42 = vpack.c.bf16 %v1402_v6, %v1400_v5  ;;  %v1820_v5 = vld [vmem:[#allocation26 + $0x20] sm:$0xff]  ;;  %v1821_v6 = vld [vmem:[#allocation26 + $0x28] sm:$0xff] }
 0x427   :  { %2565 = vmatpush1.bf16.msra.mxu0 %v2564_v22  ;;  %v1608_v22 = vld [vmem:[#allocation20 + $0x90] sm:$0xff] }
 0x428   :  { %2567 = vmatprep.subr.bf16.mxu0 %v2566_v23  ;;  %v1609_v23 = vld [vmem:[#allocation20 + $0x98] sm:$0xff] }
 0x429   :  { %2614 = vmatpush1.bf16.msra.mxu1 %v2613_v20  ;;  %v2628_v25 = vpack.c.bf16 %v1609_v23, %v1608_v22  ;;  %v1613_v22 = vld [vmem:[#allocation20 + $0xb8] sm:$0xff] }
 0x42a   :  { %2615 = vmatprep.subr.bf16.mxu1 %v3239_v9 }
 0x42b   :  { %2569 = vmatpush1.bf16.msra.mxu0 %v2568_v29 }
 0x42c   :  { %2571 = vmatprep.subr.bf16.mxu0 %v2570_v32 }
 0x42d   :  { %2617 = vmatpush1.bf16.msra.mxu1 %v2616_v11  ;;  %v1401_v11 = vld [vmem:[#allocation17 + $0x250] sm:$0xf] }
 0x42e   :  { %2618 = vmatprep.subr.bf16.mxu1 %v3239_v9  ;;  %v2597_v33 = vpack.c.bf16 %v1401_v11, %v1399_v8 }
 0x42f   :  { %2573 = vmatpush1.bf16.msra.mxu0 %v2572_v39  ;;  %v986_v39 = vrot.slane %v977_v36, %v3609_v35 }
 0x430   :  { %2575 = vmatprep.subr.bf16.mxu0 %v2574_v40 }
 0x431   :  { %2620 = vmatpush1.bf16.msra.mxu1 %v2619_v13 }
 0x432   :  { %2621 = vmatprep.subr.bf16.mxu1 %v3239_v9 }
 0x433   :  { %2577 = vmatpush1.bf16.msra.mxu0 %v2576_v44 }
 0x434   :  { %2579 = vmatprep.subr.bf16.mxu0 %v2578_v47 }
 0x435   :  { %2623 = vmatpush1.bf16.msra.mxu1 %v2622_v17  ;;  %v1610_v17 = vld [vmem:[#allocation20 + $0xa0] sm:$0xff] }
 0x436   :  { %2624 = vmatprep.subr.bf16.mxu1 %v3239_v9  ;;  %v2631_v19 = vpack.c.bf16 %v1611_v18, %v1610_v17  ;;  %v1822_v18 = vld [vmem:[#allocation26 + $0x30] sm:$0xff] }
 0x437   :  { %2581 = vmatpush1.bf16.msra.mxu0 %v2580_v50 }
 0x438   :  { %2583 = vmatprep.subr.bf16.mxu0 %v2582_v53 }
 0x439   :  { %2626 = vmatpush1.bf16.msra.mxu1 %v2625_v21  ;;  %v1612_v21 = vld [vmem:[#allocation20 + $0xb0] sm:$0xff] }
 0x43a   :  { %2627 = vmatprep.subr.bf16.mxu1 %v3239_v9  ;;  %v2634_v23 = vpack.c.bf16 %v1613_v22, %v1612_v21  ;;  %v1824_v22 = vld [vmem:[#allocation26 + $0x40] sm:$0xff] }
 0x43b   :  { %2585 = vmatpush1.bf16.msra.mxu0 %v2584_v56  ;;  %v1398_v56 = vld [vmem:[#allocation17 + $0x238] sm:$0xff] }
 0x43c   :  { %2587 = vmatprep.subr.bf16.mxu0 %v2586_v59  ;;  %v2590_v2 = vpack.c.bf16 %v1398_v56, %v1396_v34  ;;  %v1714_v34 = vld [vmem:[#allocation23 + $0x38] sm:$0xff] }
 0x43d   :  { %2629 = vmatpush1.bf16.msra.mxu1 %v2628_v25  ;;  %v1614_v25 = vld [vmem:[#allocation20 + $0xc0] sm:$0xff] }
 0x43e   :  { %2630 = vmatprep.subr.bf16.mxu1 %v3239_v9 }
 0x441   :  { %2632 = vmatpush1.bf16.msra.mxu1 %v2631_v19  ;;  %v1823_v19 = vld [vmem:[#allocation26 + $0x38] sm:$0xff] }
 0x442   :  { %2633 = vmatprep.subr.bf16.mxu1 %v3239_v9  ;;  %v2672_v21 = vpack.c.bf16 %v1823_v19, %v1822_v18 }
 0x445   :  { %2635 = vmatpush1.bf16.msra.mxu1 %v2634_v23  ;;  %v1825_v23 = vld [vmem:[#allocation26 + $0x48] sm:$0xff] }
 0x446   :  { %1676 = vmatprep.subr.mxu1 %v3238_v24 }
 0x449   :  { %1677 = vmatpush1.msra.mxu1 %v1614_v25  ;;  %v2676_v25 = vpack.c.bf16 %v1825_v23, %v1824_v22 }
 0x491   :  { %v2111_v26 = vpop.f32.mrb[8].mxu0 }
 0x492   :  { %v2112_v27 = vpop.f32.mrb[9].mxu0 }
 0x493   :  { %v2113_v28 = vadd.f32 %v2112_v27, %v2111_v26  ;;  %v1707_v26 = vld [vmem:[#allocation23] sm:$0xff]  ;;  %v1708_v27 = vld [vmem:[#allocation23 + $0x8] sm:$0xff] }
 0x495   :  { %v1232_v40 = vadd.f32 %v2113_v28, %v990_v37  ;;  %v2636_v28 = vpack.c.bf16 %v1708_v27, %v1707_v26  ;;  %v2068_v26 = vld [vmem:[#allocation25] ss:$0 sm:$0xff] }
 0x497   :  { %v2114_v29 = vpop.f32.mrb[10].mxu0  ;;  %2637 = vmatprep.subr.bf16.mxu1 %v2636_v28 }
 0x498   :  { %v2115_v32 = vpop.f32.mrb[11].mxu0 }
 0x499   :  { %v2116_v30 = vadd.f32 %v2115_v32, %v2114_v29  ;;  %v1403_v29 = vld [vmem:[#allocation19] sm:$0x3] }
 0x49a   :  { %v1408_v32 = vrot.slane %v1403_v29, %v3602_v31  ;;  %v1711_v31 = vld [vmem:[#allocation23 + $0x20] sm:$0xff] }
 0x49b   :  { %v1237_v50 = vadd.f32 %v2116_v30, %v990_v37  ;;  %v1412_v30 = vrot.slane %v1403_v29, %v3609_v35  ;;  %v1712_v35 = vld [vmem:[#allocation23 + $0x28] sm:$0xff] }
 0x4cf   :  { %v1154_v41 = vpop.f32.mrb[4].mxu1  ;;  %v1306_v43 = vpop.f32.mrb[12].mxu0 }
 0x4d0   :  { %v2690_v44 = vadd.f32 %v1154_v41, %v982_v38  ;;  %v1307_v45 = vadd.f32 %v1306_v43, %v1232_v40  ;;  %v1156_v46 = vpop.f32.mrb[5].mxu1  ;;  %v1308_v47 = vpop.f32.mrb[13].mxu0  ;;  %v1709_v43 = vld [vmem:[#allocation23 + $0x10] sm:$0xff] }
 0x4d1   :  { %v2691_v48 = vadd.f32 %v1156_v46, %v986_v39 }
 0x4d2   :  { %v1315_v49 = vmul.f32 0.01, %v2690_v44  ;;  %v1317_v12 = vmul.f32 0.01, %v1307_v45 }
 0x4d3   :  { %v1316_v53 = vmul.f32 0.01, %v2691_v48  ;;  %v1160_v54 = vpop.f32.mrb[6].mxu1  ;;  %v1311_v55 = vpop.f32.mrb[14].mxu0 }
 0x4d4   :  { %v2692_v57 = vadd.f32 %v1160_v54, %v982_v38  ;;  %v1312_v58 = vadd.f32 %v1311_v55, %v1237_v50  ;;  %v1162_v59 = vpop.f32.mrb[7].mxu1  ;;  %v1313_v60 = vpop.f32.mrb[15].mxu0  ;;  %v1321_v0 = vmax.f32 %v2690_v44, %v1315_v49  ;;  %v1323_v13 = vmax.f32 %v1307_v45, %v1317_v12  ;;  %v1713_v55 = vld [vmem:[#allocation23 + $0x30] sm:$0xff] }
 0x4d5   :  { %v1322_v61 = vmax.f32 %v2691_v48, %v1316_v53  ;;  %v2693_v62 = vadd.f32 %v1162_v59, %v986_v39  ;;  %v2644_v54 = vpack.c.bf16 %v1712_v35, %v1711_v31  ;;  %v2648_v56 = vpack.c.bf16 %v1714_v34, %v1713_v55  ;;  %v1717_v60 = vld [vmem:[#allocation23 + $0x50] sm:$0xff]  ;;  %v2075_v35 = vld [vmem:[#allocation31] ss:$0 sm:$0xff] }
 0x4d6   :  { %v1318_v1 = vmul.f32 0.01, %v2692_v57  ;;  %v1320_v14 = vmul.f32 0.01, %v1312_v58 }
 0x4d7   :  { %v1319_v4 = vmul.f32 0.01, %v2693_v62  ;;  %1492 = vmatprep.mubr.f32.mxu0 %v1322_v61  ;;  %v1718_v61 = vld [vmem:[#allocation23 + $0x58] sm:$0xff] }
 0x4d8   :  { %1493 = vmatmul.mubr.f32.vlgmr.msra.gmra.mrb[16].mxu0 %v1321_v0  ;;  %v1324_v20 = vmax.f32 %v2692_v57, %v1318_v1  ;;  %v1326_v16 = vmax.f32 %v1312_v58, %v1320_v14  ;;  %v1715_v57 = vld [vmem:[#allocation23 + $0x40] sm:$0xff]  ;;  %v1716_v58 = vld [vmem:[#allocation23 + $0x48] sm:$0xff]  ;;  %v1817_v1 = vld [vmem:[#allocation26 + $0x8] sm:$0xff] }
 0x4d9   :  { %v1325_v7 = vmax.f32 %v2693_v62, %v1319_v4  ;;  %2589 = vmatpush1.bf16.msra.mxu0 %v2588_v63  ;;  %v2652_v59 = vpack.c.bf16 %v1716_v58, %v1715_v57  ;;  %v2656_v62 = vpack.c.bf16 %v1718_v61, %v1717_v60  ;;  %v1719_v63 = vld [vmem:[#allocation23 + $0x60] sm:$0xf]  ;;  %v1816_v0 = vld [vmem:[#allocation26] sm:$0xff] }
 0x4da   :  { %2591 = vmatprep.subr.bf16.mxu0 %v2590_v2  ;;  %v1818_v2 = vld [vmem:[#allocation26 + $0x10] sm:$0xff]  ;;  %v2660_v10 = vpack.c.bf16 %v1817_v1, %v1816_v0 }
 0x4db   :  { %1498 = vmatprep.mubr.f32.mxu0 %v1325_v7  ;;  %v2664_v4 = vpack.c.bf16 %v1819_v3, %v1818_v2  ;;  %v2668_v7 = vpack.c.bf16 %v1821_v6, %v1820_v5 }
 0x4dc   :  { %1499 = vmatmul.mubr.f32.gmra.mrb[18].mxu0 %v1324_v20 }
 0x4dd   :  { %2593 = vmatpush1.bf16.msra.mxu0 %v2592_v15  ;;  %1569 = vmatprep.mubr.f32.mxu0 %v3238_v24  ;;  %v2065_v15 = vld [vmem:[#allocation22] ss:$0 sm:$0xff] }
 0x4de   :  { %2596 = vmatprep.subr.msk.bf16.mxu0 %vm2595_vm6, %v2594_v42 }
 0x4e1   :  { %2599 = vmatpush1.bf16.msk.msra.mxu0 %vm2595_vm6, %v2597_v33 }
 0x4e2   :  { %2661 = vmatprep.subr.bf16.mxu0 %v2660_v10 }
 0x4e4   :  { %2063 = vmatmul.mubr.msk.f32.vlgmr.msra.gmra.mrb[16].mxu0 %vm1415_vm7, %v1323_v13 }
 0x4e5   :  { %1575 = vmatprep.mubr.f32.mxu0 %v3238_v24  ;;  %v1710_v24 = vld [vmem:[#allocation23 + $0x18] sm:$0xff]  ;;  %2663 = vmatpush3.bf16.msra.mxu0 %v2660_v10 }
 0x4e6   :  { %v2640_v50 = vpack.c.bf16 %v1710_v24, %v1709_v43  ;;  %2665 = vmatprep.subr.bf16.mxu0 %v2664_v4  ;;  %v1922_v43 = vld [vmem:[#allocation29 + $0x18] sm:$0x3f] }
 0x4e8   :  { %2064 = vmatmul.mubr.msk.f32.gmra.mrb[18].mxu0 %vm1415_vm7, %v1326_v16 }
 0x4e9   :  { %2667 = vmatpush3.bf16.msra.mxu0 %v2664_v4 }
 0x4ea   :  { %2669 = vmatprep.subr.bf16.mxu0 %v2668_v7 }
 0x4ed   :  { %2671 = vmatpush3.bf16.msra.mxu0 %v2668_v7 }
 0x4ee   :  { %2673 = vmatprep.subr.bf16.mxu0 %v2672_v21 }
 0x4f1   :  { %2675 = vmatpush3.bf16.msra.mxu0 %v2672_v21 }
 0x4f2   :  { %2677 = vmatprep.subr.bf16.mxu0 %v2676_v25 }
 0x4f5   :  { %2679 = vmatpush3.bf16.msra.mxu0 %v2676_v25 }
 0x5b7   :  { %v1571_v36 = vpop.f32.mrb[16].mxu0 }
 0x5b8   :  { %v2694_v37 = vadd.f32 %v1571_v36, %v1408_v32  ;;  %v1573_v9 = vpop.f32.mrb[17].mxu0 }
 0x5b9   :  { %v2695_v38 = vadd.f32 %v1573_v9, %v1412_v30 }
 0x5ba   :  { %v1582_v39 = vmul.f32 0.01, %v2694_v37 }
 0x5bb   :  { %v1583_v40 = vmul.f32 0.01, %v2695_v38  ;;  %v1577_v41 = vpop.f32.mrb[18].mxu0 }
 0x5bc   :  { %v2696_v44 = vadd.f32 %v1577_v41, %v1408_v32  ;;  %v1579_v45 = vpop.f32.mrb[19].mxu0  ;;  %v1586_v48 = vmax.f32 %v2694_v37, %v1582_v39  ;;  %v1920_v39 = vld [vmem:[#allocation29 + $0x8] sm:$0xff]  ;;  %v1921_v41 = vld [vmem:[#allocation29 + $0x10] sm:$0xff] }
 0x5bd   :  { %v1587_v46 = vmax.f32 %v2695_v38, %v1583_v40  ;;  %v2697_v47 = vadd.f32 %v1579_v45, %v1412_v30  ;;  %v1919_v38 = vld [vmem:[#allocation29] sm:$0xff]  ;;  %v2684_v24 = vpack.c.bf16 %v1922_v43, %v1921_v41 }
 0x5be   :  { %v1584_v49 = vmul.f32 0.01, %v2696_v44  ;;  %v2680_v40 = vpack.c.bf16 %v1920_v39, %v1919_v38 }
 0x5bf   :  { %v1585_v51 = vmul.f32 0.01, %v2697_v47  ;;  %2066 = vmatprep.mubr.msk.f32.mxu1 %vm611_vm2, %v1587_v46 }
 0x5c0   :  { %1693 = vmatmul.mubr.f32.vlgmr.msra.gmra.mrb[8].mxu1 %v1586_v48  ;;  %v1588_v53 = vmax.f32 %v2696_v44, %v1584_v49  ;;  %v2072_v44 = vld [vmem:[#allocation28] ss:$0 sm:$0xff] }
 0x5c1   :  { %v1589_v52 = vmax.f32 %v2697_v47, %v1585_v51  ;;  %2639 = vmatpush3.bf16.msra.mxu1 %v2636_v28 }
 0x5c2   :  { %2641 = vmatprep.subr.bf16.mxu1 %v2640_v50 }
 0x5c3   :  { %2067 = vmatprep.mubr.msk.f32.mxu1 %vm611_vm2, %v1589_v52 }
 0x5c4   :  { %1698 = vmatmul.mubr.f32.gmra.mrb[10].mxu1 %v1588_v53 }
 0x5c5   :  { %2643 = vmatpush3.bf16.msra.mxu1 %v2640_v50 }
 0x5c6   :  { %2645 = vmatprep.subr.bf16.mxu1 %v2644_v54 }
 0x5c9   :  { %2647 = vmatpush3.bf16.msra.mxu1 %v2644_v54 }
 0x5ca   :  { %2649 = vmatprep.subr.bf16.mxu1 %v2648_v56 }
 0x5cd   :  { %2651 = vmatpush3.bf16.msra.mxu1 %v2648_v56 }
 0x5ce   :  { %2653 = vmatprep.subr.bf16.mxu1 %v2652_v59 }
 0x5d1   :  { %2655 = vmatpush3.bf16.msra.mxu1 %v2652_v59 }
 0x5d2   :  { %2657 = vmatprep.subr.bf16.mxu1 %v2656_v62 }
 0x5d5   :  { %2659 = vmatpush3.bf16.msra.mxu1 %v2656_v62 }
 0x5d6   :  { %2174 = vmatprep.subr.msk.mxu1 %vm1001_vm4, %v1719_v63 }
 0x5d9   :  { %2175 = vmatpush3.msk.msra.mxu1 %vm1001_vm4, %v1719_v63 }
 0x5da   :  { %2681 = vmatprep.subr.bf16.mxu1 %v2680_v40 }
 0x693   :  { %v1694_v20 = vpop.f32.mrb[8].mxu1 }
 0x694   :  { %v1695_v42 = vadd.f32 %v2065_v15, %v1694_v20  ;;  %v1696_v8 = vpop.f32.mrb[9].mxu1 }
 0x696   :  { %v1703_v11 = vmul.f32 0.01, %v1695_v42 }
 0x697   :  { %v1699_v33 = vpop.f32.mrb[10].mxu1 }
 0x698   :  { %v1705_v12 = vmax.f32 %v1695_v42, %v1703_v11  ;;  %v1700_v13 = vadd.f32 %v2065_v15, %v1699_v33  ;;  %v1701_v14 = vpop.f32.mrb[11].mxu1 }
 0x69a   :  { %v1704_v16 = vmul.f32 0.01, %v1700_v13  ;;  %2176 = vmatprep.mubr.msk.f32.mxu1 %vm1727_vm8, %v1705_v12 }
 0x69c   :  { %v1706_v17 = vmax.f32 %v1700_v13, %v1704_v16 }
 0x69e   :  { %2177 = vmatmul.mubr.msk.f32.vlgmr.msra.gmra.mrb[12].mxu1 %vm1727_vm8, %v1706_v17 }
 0x69f   :  { %2683 = vmatpush3.bf16.msra.mxu1 %v2680_v40 }
 0x6a0   :  { %2686 = vmatprep.subr.msk.bf16.mxu1 %vm2685_vm11, %v2684_v24 }
 0x6a3   :  { %2689 = vmatpush3.bf16.msk.msra.mxu1 %vm2685_vm11, %v2684_v24 }
 0x771   :  { %v2178_v27 = vpop.f32.mrb[12].mxu1 }
 0x772   :  { %v1809_v28 = vadd.f32 %v2178_v27, %v2068_v26  ;;  %v1803_v29 = vpop.f32.mrb[13].mxu1 }
 0x773   :  { %v1804_v32 = vadd.f32 %v2068_v26, %v1803_v29 }
 0x774   :  { %v1813_v30 = vmul.f32 0.01, %v1809_v28 }
 0x775   :  { %v1812_v36 = vmul.f32 0.01, %v1804_v32 }
 0x776   :  { %v1815_v9 = vmax.f32 %v1809_v28, %v1813_v30 }
 0x777   :  { %v1814_v37 = vmax.f32 %v1804_v32, %v1812_v36 }
 0x779   :  { %2199 = vmatprep.mubr.msk.f32.mxu0 %vm1833_vm9, %v1814_v37 }
 0x77a   :  { %2200 = vmatmul.mubr.msk.f32.vlgmr.msra.gmra.mrb[20].mxu0 %vm1833_vm9, %v1815_v9 }
 0x84d   :  { %v2201_v45 = vpop.f32.mrb[20].mxu0 }
 0x84e   :  { %v1912_v46 = vadd.f32 %v2201_v45, %v2072_v44  ;;  %v1906_v47 = vpop.f32.mrb[21].mxu0 }
 0x84f   :  { %v1907_v48 = vadd.f32 %v2072_v44, %v1906_v47 }
 0x850   :  { %v1916_v49 = vmul.f32 0.01, %v1912_v46 }
 0x851   :  { %v1915_v50 = vmul.f32 0.01, %v1907_v48 }
 0x852   :  { %v1918_v31 = vmax.f32 %v1912_v46, %v1916_v49 }
 0x853   :  { %v1917_v51 = vmax.f32 %v1907_v48, %v1915_v50 }
 0x855   :  { %2210 = vmatprep.mubr.msk.f32.mxu1 %vm1930_vm12, %v1917_v51 }
 0x856   :  { %2211 = vmatmul.mubr.msk.f32.vlgmr.msra.gmra.mrb[14].mxu1 %vm1930_vm12, %v1918_v31 }
 0x929   :  { %v2212_v52 = vpop.f32.mrb[14].mxu1 }
 0x92a   :  { %v2013_v53 = vadd.f32 %v2212_v52, %v2075_v35  ;;  %v2007_v54 = vpop.f32.mrb[15].mxu1 }
 0x92b   :  { %v2008_v55 = vadd.f32 %v2075_v35, %v2007_v54 }
 0x92c   :  { %2018 = vst.msk [vmem:[#allocation32 + $0x8] sm:$0xff] %vm2016_vm13, %v2013_v53 }
 0x92d   :  { %2017 = vst.msk [vmem:[#allocation32] sm:$0xff] %vm2016_vm13, %v2008_v55 }
 0x92e   :  { %3175 = shalt.err (!%p3172_p2)
}
 0x92f   :  { %s3746_s11 = sld [smem:[#allocation48_spill]] }
 0x935   :  { %s3176_s24 = scalar_lea.hbm %s3746_s11, 256 }
 0x936   :  { %p3177_p3 = scmp.ne.s32.totalorder %s3746_s11, %s3176_s24  ;;  %p3180_p4 = scmp.lt.u32.totalorder %s3176_s24, %s3746_s11 }
 0x938   :  { %p3182_p5 = pnand %p3180_p4, %p3177_p3 }
 0x93a   :  { %3185 = shalt.err (!%p3182_p5)
}
 0x93b   :  { %2030 = dma.vmem_to_hbm [thread:$0]  %s2025_s12, 256, %s3746_s11, [#allocation4], %s3221_s2, %s3221_s2, %s3222_s28  }
 0x93c   :  { %3206 = dma.done.wait [#allocation4], 256  }
 0x93d   :  { %3207 = vsyncadd [#allocation4], 4294967040 }
 0x93e   :  { %2034 = vsyncpa [#allocation3], 1 }
 0x93f   :  { %2035 = vsyncpa [#allocation6], 1 }
 0x940   :  { %2036 = vsyncpa [#allocation9], 1 }
 0x941   :  { %2037 = vsyncpa [#allocation12], 1 }
 0x942   :  { %2038 = vsyncpa [#allocation15], 1 }
 0x943   :  { %2039 = vsyncpa [#allocation18], 1 }
 0x944   :  { %2040 = vsyncpa [#allocation21], 1 }
 0x945   :  { %2041 = vsyncpa [#allocation24], 1 }
 0x946   :  { %2042 = vsyncpa [#allocation27], 1 }
 0x947   :  { %2043 = vsyncpa [#allocation30], 1 }
 0x948   :  { %2044 = vsyncpa [#allocation4], 1 }

</bundles_post_ra>
